<compile_context>
chip_gen: v5e
topology: v5e:2x2
jax: 0.10.0
libtpu: 0.0.40
codegen_flags: <defaults>
</compile_context>

<pallas_src>
import functools

import jax
import jax.numpy as jnp
from jax import lax
from jax.experimental import pallas as pl
from jax.experimental.pallas import tpu as pltpu


# dot_general dimension numbers for A @ B.T (contract the last dims of both).
_NT_DIMS = (((1,), (1,)), ((), ()))


def mha_kernel(q_ref, k_ref, v_ref, wq_ref, wk_ref, wv_ref, wo_ref, bo_ref,
               o_ref, qp_ref, kp_ref, vp_ref, acc_ref, *, head_dim):
    h = pl.program_id(2)

    @pl.when(h == 0)
    def _init():
        # Full-width projections once per (batch, q-tile); kept resident in VMEM in
        # transposed (C, seq) layout so per-head slices below are sublane slices.
        # Weights are in (out, in) layout, so W @ x^T is an "NT" contraction.
        qp_ref[...] = lax.dot_general(
            wq_ref[...], q_ref[0], _NT_DIMS,
            preferred_element_type=jnp.float32).astype(qp_ref.dtype)
        kp_ref[...] = lax.dot_general(
            wk_ref[...], k_ref[0], _NT_DIMS,
            preferred_element_type=jnp.float32).astype(kp_ref.dtype)
        vp_ref[...] = lax.dot_general(
            wv_ref[...], v_ref[0], _NT_DIMS,
            preferred_element_type=jnp.float32).astype(vp_ref.dtype)
        acc_ref[...] = jnp.zeros_like(acc_ref)

    off = pl.multiple_of(h * head_dim, head_dim)
    qh = qp_ref[pl.ds(off, head_dim), :]        # (hd, TILE_N)  (scale folded in wq)
    kh = kp_ref[pl.ds(off, head_dim), :]        # (hd, M)
    vh = vp_ref[pl.ds(off, head_dim), :]        # (hd, M)

    # Scores: s[n, m] = sum_d qh[d, n] * kh[d, m].
    s = jnp.dot(qh.T, kh, preferred_element_type=jnp.float32)   # (TILE_N, M)
    s = s - jnp.max(s, axis=-1, keepdims=True)
    p = jnp.exp(s)
    l = jnp.sum(p, axis=-1, keepdims=True)                      # (TILE_N, 1)

    # x[n, d] = sum_m p[n, m] * vh[d, m]; normalize afterwards with the approx
    # reciprocal (TILE_N*hd multiplies instead of TILE_N*M, and the divide goes
    # to the otherwise-idle EUP slot).
    x = lax.dot_general(p.astype(vh.dtype), vh, _NT_DIMS,
                        preferred_element_type=jnp.float32)     # (TILE_N, hd)
    x = x * pl.reciprocal(l, approx=True)

    # Concat-over-heads folded into the output projection:
    #   o += x_h @ wo.T[h*hd:(h+1)*hd, :]
    wo_h = wo_ref[pl.ds(off, head_dim), :]                      # (hd, C)
    acc_ref[...] += jnp.dot(x.astype(wo_h.dtype), wo_h,
                            preferred_element_type=jnp.float32)

    @pl.when(h == pl.num_programs(2) - 1)
    def _finalize():
        o_ref[0] = (acc_ref[...] + bo_ref[...]).astype(o_ref.dtype)


def _pick_q_tile(n):
    for t in (512, 256, 128):
        if n % t == 0:
            return t
    return n


def multi_head_attention(q, k, v, wq, wk, wv, wo, bo, *, num_heads):
    """q: (B, N, C); k, v: (B, M, C).
    wq, wk, wv, wo: (C, C) in nn.Linear (out_features, in_features) layout; bo: (C,).
    """
    B, N, C = q.shape
    Bk, M, Ck = k.shape
    assert (Bk, Ck) == (B, C) and v.shape == (B, M, C)
    assert C % num_heads == 0, "C must be divisible by num_heads"
    head_dim = C // num_heads
    assert head_dim % 8 == 0, "head_dim must be a multiple of 8 for this kernel"
    scale = head_dim ** (-0.5)

    # Fold the attention scale into the Q weight (exact, zero in-kernel cost); put the
    # output projection in (in, out) layout so each head's block is a row (sublane)
    # slice inside the kernel.
    wq_s = (wq * scale).astype(wq.dtype)
    wo_t = wo.T
    bo2 = bo.reshape(1, C)

    tile_n = _pick_q_tile(N)
    num_q_tiles = N // tile_n
    cdt = q.dtype
    itemsize = jnp.dtype(cdt).itemsize

    # Rough VMEM need: double-buffered q/k/v/out blocks, resident weights, scratch.
    est_vmem = (2 * (2 * tile_n * C + 2 * M * C) * itemsize
                + 2 * (4 * C * C + C) * itemsize
                + (tile_n * C + 2 * M * C) * itemsize
                + tile_n * C * 4)
    cp = dict(dimension_semantics=("parallel", "parallel", "arbitrary"))
    if est_vmem > 12 * 1024 * 1024:
        # Raise the scoped-VMEM limit only for large shapes, with headroom below
        # v7x's 64 MiB / TensorCore.  (Constant-index weight blocks would also be
        # candidates for pipeline_mode=pl.Buffered(1) to save their second buffer.)
        cp["vmem_limit_bytes"] = min(2 * est_vmem, 56 * 1024 * 1024)

    kernel = functools.partial(mha_kernel, head_dim=head_dim)

    return pl.pallas_call(
        kernel,
        out_shape=jax.ShapeDtypeStruct((B, N, C), q.dtype),
        grid_spec=pltpu.PrefetchScalarGridSpec(
            num_scalar_prefetch=0,
            grid=(B, num_q_tiles, num_heads),
            in_specs=[
                pl.BlockSpec((1, tile_n, C), lambda b, t, h: (b, t, 0)),   # q tile
                pl.BlockSpec((1, M, C), lambda b, t, h: (b, 0, 0)),        # k
                pl.BlockSpec((1, M, C), lambda b, t, h: (b, 0, 0)),        # v
                pl.BlockSpec((C, C), lambda b, t, h: (0, 0)),              # wq * scale
                pl.BlockSpec((C, C), lambda b, t, h: (0, 0)),              # wk
                pl.BlockSpec((C, C), lambda b, t, h: (0, 0)),              # wv
                pl.BlockSpec((C, C), lambda b, t, h: (0, 0)),              # wo.T
                pl.BlockSpec((1, C), lambda b, t, h: (0, 0)),              # bias
            ],
            out_specs=pl.BlockSpec((1, tile_n, C), lambda b, t, h: (b, t, 0)),
            scratch_shapes=[
                pltpu.VMEM((C, tile_n), cdt),           # Q projection, (C, TILE_N)
                pltpu.VMEM((C, M), cdt),                # K projection, (C, M)
                pltpu.VMEM((C, M), cdt),                # V projection, (C, M)
                pltpu.VMEM((tile_n, C), jnp.float32),   # output accumulator
            ],
        ),
        compiler_params=pltpu.CompilerParams(**cp),
    )(q, k, v, wq_s, wk, wv, wo_t, bo2)


def reference(q, k, v, wq, wk, wv, wo, bo, *, num_heads):
    B, N, C = q.shape
    _, M, _ = k.shape
    hd = C // num_heads
    scale = hd ** (-0.5)
    qp = (q @ wq.T).reshape(B, N, num_heads, hd).transpose(0, 2, 1, 3)
    kp = (k @ wk.T).reshape(B, M, num_heads, hd).transpose(0, 2, 1, 3)
    vp = (v @ wv.T).reshape(B, M, num_heads, hd).transpose(0, 2, 1, 3)
    attn = jnp.einsum('bhnd,bhmd->bhnm', qp, kp) * scale
    attn = jax.nn.softmax(attn, axis=-1)
    x = jnp.einsum('bhnm,bhmd->bhnd', attn, vp)
    x = x.transpose(0, 2, 1, 3).reshape(B, N, C)
    return x @ wo.T + bo


if __name__ == "__main__":
    # (8,128)-aligned shapes so every block is lane-dense (per the perf review).
    B, N, M, C = 2, 128, 128, 128
    num_heads = 8                       # head_dim = 16

    key = jax.random.PRNGKey(0)
    kq, kk, kv, kwq, kwk, kwv, kwo, kbo = jax.random.split(key, 8)

    q = jax.random.normal(kq, (B, N, C), dtype=jnp.float32)
    k = jax.random.normal(kk, (B, M, C), dtype=jnp.float32)
    v = jax.random.normal(kv, (B, M, C), dtype=jnp.float32)

    # nn.Linear-style weights, stored as (out_features, in_features).
    wq = 0.02 * jax.random.normal(kwq, (C, C), dtype=jnp.float32)
    wk = 0.02 * jax.random.normal(kwk, (C, C), dtype=jnp.float32)
    wv = 0.02 * jax.random.normal(kwv, (C, C), dtype=jnp.float32)
    wo = 0.02 * jax.random.normal(kwo, (C, C), dtype=jnp.float32)
    bo = 0.02 * jax.random.normal(kbo, (C,), dtype=jnp.float32)

    out = multi_head_attention(q, k, v, wq, wk, wv, wo, bo, num_heads=num_heads)
    out = jax.block_until_ready(out)

    ref = reference(q, k, v, wq, wk, wv, wo, bo, num_heads=num_heads)
    assert out.shape == (B, N, C)
    err = jnp.max(jnp.abs(out - ref))
    # Tolerance covers the approximate (EUP) softmax reciprocal and MXU rounding.
    assert jnp.allclose(out, ref, atol=1e-3, rtol=1e-2), f"max abs err = {err}"

    print("KERNEL_OK")
</pallas_src>

<mosaic_0001>
module attributes {stable_mosaic.version = 11 : i64} {
  func.func @mha_kernel(%arg0: i32, %arg1: i32, %arg2: i32, %arg3: memref<1x128x128xf32, #tpu.memory_space<vmem>>, %arg4: memref<1x128x128xf32, #tpu.memory_space<vmem>>, %arg5: memref<1x128x128xf32, #tpu.memory_space<vmem>>, %arg6: memref<128x128xf32, #tpu.memory_space<vmem>>, %arg7: memref<128x128xf32, #tpu.memory_space<vmem>>, %arg8: memref<128x128xf32, #tpu.memory_space<vmem>>, %arg9: memref<128x128xf32, #tpu.memory_space<vmem>>, %arg10: memref<1x128xf32, #tpu.memory_space<vmem>>, %arg11: memref<1x128x128xf32, #tpu.memory_space<vmem>>, %arg12: memref<128x128xf32, #tpu.memory_space<vmem>>, %arg13: memref<128x128xf32, #tpu.memory_space<vmem>>, %arg14: memref<128x128xf32, #tpu.memory_space<vmem>>, %arg15: memref<128x128xf32, #tpu.memory_space<vmem>>) attributes {dimension_semantics = [#tpu.dimension_semantics<parallel>, #tpu.dimension_semantics<parallel>, #tpu.dimension_semantics<arbitrary>], iteration_bounds = array<i64: 2, 1, 8>, scalar_prefetch = 0 : i64, scratch_operands = 4 : i64, tpu.core_type = #tpu.core_type<tc>, window_params = [{transform_indices = @transform_0, window_bounds = array<i64: 1, 128, 128>}, {transform_indices = @transform_1, window_bounds = array<i64: 1, 128, 128>}, {transform_indices = @transform_2, window_bounds = array<i64: 1, 128, 128>}, {pipeline_mode = #tpu.pipeline_mode<synchronous>, transform_indices = @transform_3, window_bounds = array<i64: 128, 128>}, {pipeline_mode = #tpu.pipeline_mode<synchronous>, transform_indices = @transform_4, window_bounds = array<i64: 128, 128>}, {pipeline_mode = #tpu.pipeline_mode<synchronous>, transform_indices = @transform_5, window_bounds = array<i64: 128, 128>}, {pipeline_mode = #tpu.pipeline_mode<synchronous>, transform_indices = @transform_6, window_bounds = array<i64: 128, 128>}, {pipeline_mode = #tpu.pipeline_mode<synchronous>, transform_indices = @transform_7, window_bounds = array<i64: 1, 128>}, {transform_indices = @transform_8, window_bounds = array<i64: 1, 128, 128>}]} {
    %c0_i32 = arith.constant 0 : i32
    %0 = arith.cmpi eq, %arg2, %c0_i32 : i32
    %1 = arith.extui %0 : i1 to i32
    %c0_i32_0 = arith.constant 0 : i32
    %2 = arith.cmpi ne, %1, %c0_i32_0 : i32
    scf.if %2 {
      %c0_13 = arith.constant 0 : index
      %c0_14 = arith.constant 0 : index
      %33 = vector.load %arg6[%c0_13, %c0_14] : memref<128x128xf32, #tpu.memory_space<vmem>>, vector<128x128xf32>
      %c0_15 = arith.constant 0 : index
      %c0_16 = arith.constant 0 : index
      %c0_17 = arith.constant 0 : index
      %34 = vector.load %arg3[%c0_15, %c0_16, %c0_17] : memref<1x128x128xf32, #tpu.memory_space<vmem>>, vector<1x128x128xf32>
      %35 = vector.shape_cast %34 : vector<1x128x128xf32> to vector<128x128xf32>
      %cst_18 = arith.constant dense<0.000000e+00> : vector<128x128xf32>
      %36 = tpu.matmul %33, %35, %cst_18 {dimension_numbers = #tpu.dot_dimension_numbers<[1], [1], [0], [0], [0, 0, 1, 0], [], []>} : vector<128x128xf32>, vector<128x128xf32>, vector<128x128xf32> -> vector<128x128xf32>
      %c0_19 = arith.constant 0 : index
      %c0_20 = arith.constant 0 : index
      %37 = vector.load %arg12[%c0_19, %c0_20] : memref<128x128xf32, #tpu.memory_space<vmem>>, vector<128x128xf32>
      tpu.vector_store %arg12[%c0_19, %c0_20], %36 {strides = array<i32>} : memref<128x128xf32, #tpu.memory_space<vmem>>, vector<128x128xf32>,
      %c0_21 = arith.constant 0 : index
      %c0_22 = arith.constant 0 : index
      %38 = vector.load %arg7[%c0_21, %c0_22] : memref<128x128xf32, #tpu.memory_space<vmem>>, vector<128x128xf32>
      %c0_23 = arith.constant 0 : index
      %c0_24 = arith.constant 0 : index
      %c0_25 = arith.constant 0 : index
      %39 = vector.load %arg4[%c0_23, %c0_24, %c0_25] : memref<1x128x128xf32, #tpu.memory_space<vmem>>, vector<1x128x128xf32>
      %40 = vector.shape_cast %39 : vector<1x128x128xf32> to vector<128x128xf32>
      %cst_26 = arith.constant dense<0.000000e+00> : vector<128x128xf32>
      %41 = tpu.matmul %38, %40, %cst_26 {dimension_numbers = #tpu.dot_dimension_numbers<[1], [1], [0], [0], [0, 0, 1, 0], [], []>} : vector<128x128xf32>, vector<128x128xf32>, vector<128x128xf32> -> vector<128x128xf32>
      %c0_27 = arith.constant 0 : index
      %c0_28 = arith.constant 0 : index
      %42 = vector.load %arg13[%c0_27, %c0_28] : memref<128x128xf32, #tpu.memory_space<vmem>>, vector<128x128xf32>
      tpu.vector_store %arg13[%c0_27, %c0_28], %41 {strides = array<i32>} : memref<128x128xf32, #tpu.memory_space<vmem>>, vector<128x128xf32>,
      %c0_29 = arith.constant 0 : index
      %c0_30 = arith.constant 0 : index
      %43 = vector.load %arg8[%c0_29, %c0_30] : memref<128x128xf32, #tpu.memory_space<vmem>>, vector<128x128xf32>
      %c0_31 = arith.constant 0 : index
      %c0_32 = arith.constant 0 : index
      %c0_33 = arith.constant 0 : index
      %44 = vector.load %arg5[%c0_31, %c0_32, %c0_33] : memref<1x128x128xf32, #tpu.memory_space<vmem>>, vector<1x128x128xf32>
      %45 = vector.shape_cast %44 : vector<1x128x128xf32> to vector<128x128xf32>
      %cst_34 = arith.constant dense<0.000000e+00> : vector<128x128xf32>
      %46 = tpu.matmul %43, %45, %cst_34 {dimension_numbers = #tpu.dot_dimension_numbers<[1], [1], [0], [0], [0, 0, 1, 0], [], []>} : vector<128x128xf32>, vector<128x128xf32>, vector<128x128xf32> -> vector<128x128xf32>
      %c0_35 = arith.constant 0 : index
      %c0_36 = arith.constant 0 : index
      %47 = vector.load %arg14[%c0_35, %c0_36] : memref<128x128xf32, #tpu.memory_space<vmem>>, vector<128x128xf32>
      tpu.vector_store %arg14[%c0_35, %c0_36], %46 {strides = array<i32>} : memref<128x128xf32, #tpu.memory_space<vmem>>, vector<128x128xf32>,
      %cst_37 = arith.constant 0.000000e+00 : f32
      %48 = vector.broadcast %cst_37 : f32 to vector<128x128xf32>
      %c0_38 = arith.constant 0 : index
      %c0_39 = arith.constant 0 : index
      %49 = vector.load %arg15[%c0_38, %c0_39] : memref<128x128xf32, #tpu.memory_space<vmem>>, vector<128x128xf32>
      tpu.vector_store %arg15[%c0_38, %c0_39], %48 {strides = array<i32>} : memref<128x128xf32, #tpu.memory_space<vmem>>, vector<128x128xf32>,
    } else {
    }
    %c16_i32 = arith.constant 16 : i32
    %3 = arith.muli %arg2, %c16_i32 : i32
    %4 = tpu.assume_multiple %3, 16 : i32
    %5 = arith.index_cast %4 : i32 to index
    %c0 = arith.constant 0 : index
    %6 = vector.load %arg12[%5, %c0] : memref<128x128xf32, #tpu.memory_space<vmem>>, vector<16x128xf32>
    %7 = arith.index_cast %4 : i32 to index
    %c0_1 = arith.constant 0 : index
    %8 = vector.load %arg13[%7, %c0_1] : memref<128x128xf32, #tpu.memory_space<vmem>>, vector<16x128xf32>
    %9 = arith.index_cast %4 : i32 to index
    %c0_2 = arith.constant 0 : index
    %10 = vector.load %arg14[%9, %c0_2] : memref<128x128xf32, #tpu.memory_space<vmem>>, vector<16x128xf32>
    %11 = tpu.transpose %6, [1, 0] : vector<16x128xf32> -> vector<128x16xf32>
    %cst = arith.constant dense<0.000000e+00> : vector<128x128xf32>
    %12 = tpu.matmul %11, %8, %cst {dimension_numbers = #tpu.dot_dimension_numbers<[1], [0], [0], [1], [0, 0, 1, 1], [], []>} : vector<128x16xf32>, vector<16x128xf32>, vector<128x128xf32> -> vector<128x128xf32>
    %cst_3 = arith.constant dense<0xFF800000> : vector<128xf32>
    %13 = vector.multi_reduction <maximumf>, %12, %cst_3 [1] : vector<128x128xf32> to vector<128xf32>
    %14 = vector.shape_cast %13 : vector<128xf32> to vector<128x1xf32>
    %15 = vector.broadcast %14 : vector<128x1xf32> to vector<128x128xf32>
    %16 = arith.subf %12, %15 : vector<128x128xf32>
    %17 = math.exp %16 : vector<128x128xf32>
    %cst_4 = arith.constant dense<0.000000e+00> : vector<128xf32>
    %18 = vector.multi_reduction <add>, %17, %cst_4 [1] : vector<128x128xf32> to vector<128xf32>
    %19 = vector.shape_cast %18 : vector<128xf32> to vector<128x1xf32>
    %cst_5 = arith.constant dense<0.000000e+00> : vector<128x16xf32>
    %20 = tpu.matmul %17, %10, %cst_5 {dimension_numbers = #tpu.dot_dimension_numbers<[1], [1], [0], [0], [0, 0, 1, 0], [], []>} : vector<128x128xf32>, vector<16x128xf32>, vector<128x16xf32> -> vector<128x16xf32>
    %21 = tpu.reciprocal %19 {approx = true} : vector<128x1xf32> -> vector<128x1xf32>
    %22 = vector.broadcast %21 : vector<128x1xf32> to vector<128x16xf32>
    %23 = arith.mulf %20, %22 : vector<128x16xf32>
    %24 = arith.index_cast %4 : i32 to index
    %c0_6 = arith.constant 0 : index
    %25 = vector.load %arg9[%24, %c0_6] : memref<128x128xf32, #tpu.memory_space<vmem>>, vector<16x128xf32>
    %c0_7 = arith.constant 0 : index
    %c0_8 = arith.constant 0 : index
    %26 = vector.load %arg15[%c0_7, %c0_8] : memref<128x128xf32, #tpu.memory_space<vmem>>, vector<128x128xf32>
    %cst_9 = arith.constant dense<0.000000e+00> : vector<128x128xf32>
    %27 = tpu.matmul %23, %25, %cst_9 {dimension_numbers = #tpu.dot_dimension_numbers<[1], [0], [0], [1], [0, 0, 1, 1], [], []>} : vector<128x16xf32>, vector<16x128xf32>, vector<128x128xf32> -> vector<128x128xf32>
    %28 = arith.addf %26, %27 : vector<128x128xf32>
    %c0_10 = arith.constant 0 : index
    %c0_11 = arith.constant 0 : index
    %29 = vector.load %arg15[%c0_10, %c0_11] : memref<128x128xf32, #tpu.memory_space<vmem>>, vector<128x128xf32>
    tpu.vector_store %arg15[%c0_10, %c0_11], %28 {strides = array<i32>} : memref<128x128xf32, #tpu.memory_space<vmem>>, vector<128x128xf32>,
    %c7_i32 = arith.constant 7 : i32
    %30 = arith.cmpi eq, %arg2, %c7_i32 : i32
    %31 = arith.extui %30 : i1 to i32
    %c0_i32_12 = arith.constant 0 : i32
    %32 = arith.cmpi ne, %31, %c0_i32_12 : i32
    scf.if %32 {
      %c0_13 = arith.constant 0 : index
      %c0_14 = arith.constant 0 : index
      %33 = vector.load %arg15[%c0_13, %c0_14] : memref<128x128xf32, #tpu.memory_space<vmem>>, vector<128x128xf32>
      %c0_15 = arith.constant 0 : index
      %c0_16 = arith.constant 0 : index
      %34 = vector.load %arg10[%c0_15, %c0_16] : memref<1x128xf32, #tpu.memory_space<vmem>>, vector<1x128xf32>
      %35 = vector.broadcast %34 : vector<1x128xf32> to vector<128x128xf32>
      %36 = arith.addf %33, %35 : vector<128x128xf32>
      %c0_17 = arith.constant 0 : index
      %c0_18 = arith.constant 0 : index
      %c0_19 = arith.constant 0 : index
      %37 = vector.load %arg11[%c0_17, %c0_18, %c0_19] : memref<1x128x128xf32, #tpu.memory_space<vmem>>, vector<1x128x128xf32>
      %38 = vector.shape_cast %37 : vector<1x128x128xf32> to vector<128x128xf32>
      %39 = vector.shape_cast %36 : vector<128x128xf32> to vector<1x128x128xf32>
      tpu.vector_store %arg11[%c0_17, %c0_18, %c0_19], %39 {strides = array<i32>} : memref<1x128x128xf32, #tpu.memory_space<vmem>>, vector<1x128x128xf32>,
    } else {
    }
    return
  }
  func.func @transform_0(%arg0: i32, %arg1: i32, %arg2: i32) -> (i32, i32, i32) {
    %c0_i32 = arith.constant 0 : i32
    %c0_i32_0 = arith.constant 0 : i32
    return %arg0, %arg1, %c0_i32 : i32, i32, i32
  }
  func.func @transform_1(%arg0: i32, %arg1: i32, %arg2: i32) -> (i32, i32, i32) {
    %c0_i32 = arith.constant 0 : i32
    %c0_i32_0 = arith.constant 0 : i32
    %c0_i32_1 = arith.constant 0 : i32
    return %arg0, %c0_i32, %c0_i32_0 : i32, i32, i32
  }
  func.func @transform_2(%arg0: i32, %arg1: i32, %arg2: i32) -> (i32, i32, i32) {
    %c0_i32 = arith.constant 0 : i32
    %c0_i32_0 = arith.constant 0 : i32
    %c0_i32_1 = arith.constant 0 : i32
    return %arg0, %c0_i32, %c0_i32_0 : i32, i32, i32
  }
  func.func @transform_3(%arg0: i32, %arg1: i32, %arg2: i32) -> (i32, i32) {
    %c0_i32 = arith.constant 0 : i32
    %c0_i32_0 = arith.constant 0 : i32
    %c0_i32_1 = arith.constant 0 : i32
    return %c0_i32, %c0_i32_0 : i32, i32
  }
  func.func @transform_4(%arg0: i32, %arg1: i32, %arg2: i32) -> (i32, i32) {
    %c0_i32 = arith.constant 0 : i32
    %c0_i32_0 = arith.constant 0 : i32
    %c0_i32_1 = arith.constant 0 : i32
    return %c0_i32, %c0_i32_0 : i32, i32
  }
  func.func @transform_5(%arg0: i32, %arg1: i32, %arg2: i32) -> (i32, i32) {
    %c0_i32 = arith.constant 0 : i32
    %c0_i32_0 = arith.constant 0 : i32
    %c0_i32_1 = arith.constant 0 : i32
    return %c0_i32, %c0_i32_0 : i32, i32
  }
  func.func @transform_6(%arg0: i32, %arg1: i32, %arg2: i32) -> (i32, i32) {
    %c0_i32 = arith.constant 0 : i32
    %c0_i32_0 = arith.constant 0 : i32
    %c0_i32_1 = arith.constant 0 : i32
    return %c0_i32, %c0_i32_0 : i32, i32
  }
  func.func @transform_7(%arg0: i32, %arg1: i32, %arg2: i32) -> (i32, i32) {
    %c0_i32 = arith.constant 0 : i32
    %c0_i32_0 = arith.constant 0 : i32
    %c0_i32_1 = arith.constant 0 : i32
    return %c0_i32, %c0_i32_0 : i32, i32
  }
  func.func @transform_8(%arg0: i32, %arg1: i32, %arg2: i32) -> (i32, i32, i32) {
    %c0_i32 = arith.constant 0 : i32
    %c0_i32_0 = arith.constant 0 : i32
    return %arg0, %arg1, %c0_i32 : i32, i32, i32
  }
}

</mosaic_0001>

<bundles_post_ra>
// kernel: tpu_custom_call.1
= control target key start
LH: loop header
LB: loop body
LE: loop exit
PB: predicated region body
PF: predicated region fallthrough
CT: control target
= control target key end

     0   :  { %s2796_s0 = inlined_call_operand.hbm [shape: f32[2,128,128], index: 0, kind: input, shape index: {}]   ;;  %s2797_s1 = inlined_call_operand.hbm [shape: f32[2,128,128], index: 1, kind: input, shape index: {}]   ;;  %s2798_s2 = inlined_call_operand.hbm [shape: f32[2,128,128], index: 2, kind: input, shape index: {}]   ;;  %s2799_s3 = inlined_call_operand.hbm [shape: f32[128,128], index: 3, kind: input, shape index: {}]   ;;  %s2800_s4 = inlined_call_operand.hbm [shape: f32[128,128], index: 4, kind: input, shape index: {}]   ;;  %s2801_s5 = inlined_call_operand.hbm [shape: f32[128,128], index: 5, kind: input, shape index: {}]   ;;  %s2802_s6 = inlined_call_operand.hbm [shape: f32[128,128], index: 6, kind: input, shape index: {}]   ;;  %s2803_s7 = inlined_call_operand.vmem [shape: f32[1,128], index: 7, kind: input, shape index: {}]   ;;  %s2804_s8 = inlined_call_operand.hbm [shape: f32[2,128,128], index: 8, kind: output, shape index: {}]  }
   0x1   :  { %2818 = sst [smem:[#allocation32_spill]] %s2796_s0 }
   0x2   :  { %2819 = sst [smem:[#allocation33_spill]] %s2797_s1 }
   0x3   :  { %2820 = sst [smem:[#allocation34_spill]] %s2799_s3 }
   0x4   :  { %2821 = sst [smem:[#allocation35_spill]] %s2800_s4 }
   0x5   :  { %2822 = sst [smem:[#allocation36_spill]] %s2801_s5 }
   0x6   :  { %2823 = sst [smem:[#allocation37_spill]] %s2804_s8 }
   0x7   :  { %13 = vsyncpa [#allocation7], 0 }
   0x8   :  { %15 = vsyncpa [#allocation7 + $0x1], 0 }
   0x9   :  { %16 = vsyncpa [#allocation10], 0 }
   0xa   :  { %18 = vsyncpa [#allocation10 + $0x1], 0 }
   0xb   :  { %19 = vsyncpa [#allocation13], 0 }
   0xc   :  { %20 = vsyncpa [#allocation16], 0 }
   0xd   :  { %21 = vsyncpa [#allocation8], 0 }
   0xe   :  { %23 = vsyncpa [#allocation8 + $0x1], 0  ;;  %s2328_s27 = smov 0   ;;  %s2330_s28 = smov 0  }
   0xf   :  { %s2332_s29 = smov 0   ;;  %s2334_s30 = smov 0  }
  0x10   :  { %s2336_s9 = smov 0   ;;  %s2338_s10 = smov 0  }
  0x11   :  { %s2340_s11 = smov 0   ;;  %s2342_s12 = smov 0  }
  0x12 LB: > { %2824 = sst [smem:[#allocation24_spill]] %s2244_s27  ;;  %s2369_s13 = sadd.s32 4294967295, %s2272_s12   ;;  %s2272_s12 = sphi %s2342_s12, %s29_s12   ;;  %s2268_s11 = sphi %s2340_s11, %s2854_s11   ;;  %s2264_s10 = sphi %s2338_s10, %s2853_s10   ;;  %s2260_s9 = sphi %s2336_s9, %s2852_s9   ;;  %s2256_s30 = sphi %s2334_s30, %s2851_s30   ;;  %s2252_s29 = sphi %s2332_s29, %s2857_s29   ;;  %s2248_s28 = sphi %s2330_s28, %s2856_s28   ;;  %s2244_s27 = sphi %s2328_s27, %s2855_s27  }
  0x13   : > { %2825 = sst [smem:[#allocation25_spill]] %s2260_s9  ;;  %s1645_s14 = sadd.s32 4294967294, %s2272_s12  }
  0x14   : > { %2826 = sst [smem:[#allocation26_spill]] %s2264_s10  ;;  %p70_p0 = scmp.ne.s32.totalorder %s2248_s28, %s2244_s27 }
  0x15   : > { %2827 = sst [smem:[#allocation27_spill]] %s2268_s11  ;;  %p71_p1 = scmp.eq.s32.totalorder %s2369_s13, 0 }
  0x16   : > { %p253_p2 = scmp.eq.s32.totalorder %s2369_s13, 15  ;;  %p259_p3 = scmp.eq.s32.totalorder %s1645_s14, 15 }
  0x17   : > { %p2378_p4 = por %p71_p1, %p70_p0  ;;  %p1646_p5 = scmp.ge.s32.totalorder %s2272_s12, 1 }
  0x18   : > { %p2383_p6 = por %p259_p3, %p70_p0  ;;  %p266_p7 = scmp.lt.s32.totalorder %s2272_s12, 17 }
  0x19   : > { %s2831_s3 = sld [smem:[#allocation34_spill]]  ;;  %s2274_s21 = smov [#allocation12]  }
  0x1a   : > { %s2829_s16 = scalar_select %p2383_p6, 1, 0 }
  0x1b   : > { %p2391_p8 = pnand %p1646_p5, %p266_p7  ;;  %s279_s22 = sshll.u32 %s2274_s21, 4  ;;  %s280_s22 = int_to_ptr.vmem [resolvable:$true] %s279_s22 }
  0x1c   : > { %2830 = sst [smem:[#allocation28_spill]] %s2829_s16  ;;  %s2805_s14 = smov 128  }
  0x1d   : > { %p1776_p9 = pneg %p2391_p8  ;;  %s2834_s5 = sld [smem:[#allocation36_spill]] }
  0x1e   : > { %s2807_s17 = smov 8   ;;  %s2277_s18 = smov [#allocation15]  }
  0x1f   : > { %s277_s19 = sshll.u32 %s2831_s3, 4  ;;  %p2399_p10 = pnand %p1776_p9, %p71_p1  ;;  %s278_s19 = int_to_ptr.hbm [resolvable:$true] %s277_s19 }
  0x20   : > { %s307_s21 = sshll.u32 %s2277_s18, 4  ;;  %s41_s24 = sadd.s32 1, %s2264_s10  ;;  %s308_s21 = int_to_ptr.vmem [resolvable:$true] %s307_s21 }
  0x21   : > { %1779 = dma.hbm_to_vmem [thread:$0]  (!%p2399_p10), %s278_s19, 2048, %s280_s22, [#allocation13], %s2805_s14, %s2805_s14, %s2807_s17  }
  0x22   : > { %s48_s25 = sadd.s32 1, %s2268_s11  ;;  %p42_p11 = scmp.ge.s32.totalorder %s41_s24, 8 }
  0x23   : > { %s305_s26 = sshll.u32 %s2834_s5, 4  ;;  %s57_s3 = sadd.s32 1, %s2252_s29  ;;  %s306_s26 = int_to_ptr.hbm [resolvable:$true] %s305_s26 }
  0x24   : > { %1785 = dma.hbm_to_vmem [thread:$0]  (!%p2399_p10), %s306_s26, 2048, %s308_s21, [#allocation16], %s2805_s14, %s2805_s14, %s2807_s17  }
  0x25   : > { %p64_p12 = scmp.ne.s32.totalorder %s2252_s29, %s2248_s28  ;;  %p65_p13 = scmp.eq.s32.totalorder %s2272_s12, 0 }
  0x26   : > { %s2859_s24 = smov (%p42_p11, %s41_s24), 0  ;;  %s2861_s25 = smov (!%p42_p11, %s48_s25), %s2268_s11 }
  0x27   : > { %2835 = sst [smem:[#allocation29_spill]] %s2859_s24  ;;  %p66_p0 = por %p65_p13, %p64_p12 }
  0x28   : > { %p2427_p3 = por %p253_p2, %p64_p12  ;;  %p50_p5 = scmp.ge.s32.totalorder %s2861_s25, 2 }
  0x29   : > { %p1807_p7 = scmp.lt.s32.totalorder %s2272_s12, 16  ;;  %s2813_s22 = sand.u32 1, %s2252_s29  }
  0x2a   : > { %s2836_s19 = scalar_select %p2427_p3, 1, 0 }
  0x2b   : > { %s2434_s26 = sshll.u32 %s2268_s11, 7  ;;  %s2863_s25 = smov (%p50_p5, %s2861_s25), 0 }
  0x2c   : > { %2837 = sst [smem:[#allocation30_spill]] %s2836_s19  ;;  %s2440_s18 = sshll.u32 %s2813_s22, 7 }
  0x2d   : > { %2838 = sst [smem:[#allocation31_spill]] %s2863_s25  ;;  %p2442_p9 = pnand %p1807_p7, %p66_p0 }
  0x2e   : > { %s52_s14 = ssub.s32 %s2268_s11, %s2863_s25  ;;  %s362_s17 = sand.u32 1, %s2272_s12  }
  0x2f   : > { %p55_p2 = scmp.eq.s32.totalorder %s52_s14, 0  ;;  %s2840_s1 = sld [smem:[#allocation33_spill]] }
  0x30   : > { %s366_s27 = scalar_lea.vmem [#allocation9], %s2440_s18  ;;  %s2841_s4 = sld [smem:[#allocation35_spill]] }
  0x31   : > { %s2450_s5 = scalar_select %p55_p2, %s2252_s29, %s57_s3  }
  0x32   : > { %s374_s8 = sshll.u32 %s366_s27, 4  ;;  %s2460_s14 = scalar_lea.sflag [#allocation10], %s362_s17  ;;  %s375_s8 = int_to_ptr.vmem [resolvable:$true] %s374_s8 }
  0x33   : > { %s2842_s3 = smov 8   ;;  %s2843_s11 = smov 128  }
  0x34   : > { %s2278_s27 = smov [#allocation14]   ;;  %s2279_s9 = smov [#allocation17]  }
  0x35   : > { %s371_s16 = scalar_lea.hbm %s2840_s1, %s2434_s26  ;;  %s293_s10 = sshll.u32 %s2278_s27, 4  ;;  %s294_s10 = int_to_ptr.vmem [resolvable:$true] %s293_s10 }
  0x36   : > { %s372_s22 = sshll.u32 %s371_s16, 4  ;;  %s291_s25 = sshll.u32 %s2841_s4, 4  ;;  %s373_s22 = int_to_ptr.hbm [resolvable:$true] %s372_s22  ;;  %s292_s25 = int_to_ptr.hbm [resolvable:$true] %s291_s25 }
  0x37   : > { %1795 = dma.hbm_to_vmem [thread:$0]  (!%p2442_p9), %s373_s22, 2048, %s375_s8, %s2460_s14, %s2843_s11, %s2843_s11, %s2842_s3  }
  0x38   : > { %s319_s1 = sshll.u32 %s2802_s6, 4  ;;  %s321_s8 = sshll.u32 %s2279_s9, 4  ;;  %s320_s1 = int_to_ptr.hbm [resolvable:$true] %s319_s1  ;;  %s322_s8 = int_to_ptr.vmem [resolvable:$true] %s321_s8 }
  0x39   : > { %1782 = dma.hbm_to_vmem [thread:$0]  (!%p2399_p10), %s292_s25, 2048, %s294_s10, [#allocation13], %s2843_s11, %s2843_s11, %s2842_s3  }
  0x3a   : > { %s2844_s0 = sld [smem:[#allocation32_spill]]  ;;  %s342_s16 = scalar_lea.vmem [#allocation6], %s2440_s18 }
  0x3b   : > { %1788 = dma.hbm_to_vmem [thread:$0]  (!%p2399_p10), %s320_s1, 2048, %s322_s8, [#allocation16], %s2843_s11, %s2843_s11, %s2842_s3  }
  0x3c   : > { %s352_s24 = sshll.u32 %s342_s16, 4  ;;  %s2845_s25 = sand.u32 1, %s2252_s29   ;;  %s353_s24 = int_to_ptr.vmem [resolvable:$true] %s352_s24 }
  0x3d   : > { %s339_s10 = scalar_lea.sflag [#allocation7], %s2845_s25  ;;  %s393_s23 = scalar_lea.hbm %s2798_s2, %s2434_s26 }
  0x3e   : > { %s394_s19 = sshll.u32 %s393_s23, 4  ;;  %s2507_s1 = sand.u32 (!%p2391_p8), 1, %s2248_s28   ;;  %s395_s19 = int_to_ptr.hbm [resolvable:$true] %s394_s19 }
  0x3f   : > { %408 = sbr.rel (%p2391_p8) target bundleno = 1259 (0x4eb), region = 52  ;;  %s411_s8 = scalar_lea.sflag (!%p2391_p8), [#allocation7], %s2507_s1 }
  0x40   : > { %s349_s22 = scalar_lea.hbm %s2844_s0, %s2434_s26  ;;  %s388_s0 = scalar_lea.vmem [#allocation11], %s2440_s18 }
  0x41   : > { %s350_s27 = sshll.u32 %s349_s22, 4  ;;  %s396_s4 = sshll.u32 %s388_s0, 4  ;;  %s351_s27 = int_to_ptr.hbm [resolvable:$true] %s350_s27  ;;  %s397_s4 = int_to_ptr.vmem [resolvable:$true] %s396_s4 }
  0x42   : > { %1792 = dma.hbm_to_vmem [thread:$0]  (!%p2442_p9), %s351_s27, 2048, %s353_s24, %s339_s10, %s2843_s11, %s2843_s11, %s2842_s3  }
  0x43   : > { %1798 = dma.hbm_to_vmem [thread:$0]  (!%p2442_p9), %s395_s19, 2048, %s397_s4, %s2460_s14, %s2843_s11, %s2843_s11, %s2842_s3  }
  0x44   : > { %s1662_s26 = sshll.u32 %s2507_s1, 7 }
  0x45   : > { %s2511_s18 = scalar_lea.vmem [#allocation6], %s1662_s26 }
  0x46   : > { %2223 = dma.done.wait (%p2378_p4), %s411_s8, 2048  }
  0x47   : > { %2225 = vsyncadd (%p2378_p4), %s411_s8, 4294965248  ;;  %s420_s0 = sand.u32 1, %s2369_s13   ;;  %s2518_s11 = scalar_lea.vmem [#allocation9], %s1662_s26 }
  0x48   : > { %s421_s4 = scalar_lea.sflag [#allocation10], %s420_s0 }
  0x49   : > { %2227 = dma.done.wait (%p2378_p4), %s421_s4, 4096  }
  0x4a   : > { %2229 = vsyncadd (%p2378_p4), %s421_s4, 4294963200  ;;  %s2524_s20 = scalar_lea.vmem [#allocation11], %s1662_s26 }
  0x4b   : > { %2231 = dma.done.wait (%p71_p1), [#allocation13], 4096  }
  0x4c   : > { %2233 = vsyncadd (%p71_p1), [#allocation13], 4294963200 }
  0x4d   : > { %2235 = dma.done.wait (%p71_p1), [#allocation16], 4096  }
  0x4e   : > { %2237 = vsyncadd (%p71_p1), [#allocation16], 4294963200  ;;  %s2534_s21 = scalar_lea.vmem [#allocation18], %s1662_s26  ;;  %p1670_p8 = scmp.ne.s32.totalorder %s2256_s30, 0 }
  0x50   : > { %503 = sbr.rel (%p1670_p8) target bundleno = 402 (0x192), region = 84 }
  0x55   : > { %v761_v0 = vld [vmem:[%s2524_s20 + $0x78] sm:$0xff]  ;;  %v760_v1 = vld [vmem:[%s2524_s20 + $0x70] sm:$0xff]  ;;  %v759_v5 = vld [vmem:[%s2524_s20 + $0x68] sm:$0xff] }
  0x56   : > { %762 = vmatpush.xpose.msra.mxu2 %v761_v0  ;;  %v2540_v2 = vld [vmem:[%s2518_s11 + $0x78] sm:$0xff]  ;;  %v2544_v3 = vld [vmem:[%s2518_s11 + $0x70] sm:$0xff]  ;;  %v2550_v6 = vld [vmem:[%s2518_s11 + $0x68] sm:$0xff] }
  0x57   : > { %649 = vmatpush.xpose.msra.mxu1 %v2540_v2  ;;  %v535_v4 = vld [vmem:[%s2511_s18 + $0x78] sm:$0xff]  ;;  %v534_v7 = vld [vmem:[%s2511_s18 + $0x70] sm:$0xff]  ;;  %v758_v8 = vld [vmem:[%s2524_s20 + $0x60] sm:$0xff] }
  0x58   : > { %536 = vmatpush.xpose.msra.mxu0 %v535_v4  ;;  %1714 = vmatpush.xpose.msra.mxu3 %v535_v4  ;;  %v2556_v9 = vld [vmem:[%s2518_s11 + $0x60] sm:$0xff]  ;;  %v533_v10 = vld [vmem:[%s2511_s18 + $0x68] sm:$0xff]  ;;  %v757_v11 = vld [vmem:[%s2524_s20 + $0x58] sm:$0xff] }
  0x59   : > { %v2562_v12 = vld [vmem:[%s2518_s11 + $0x58] sm:$0xff]  ;;  %v532_v13 = vld [vmem:[%s2511_s18 + $0x60] sm:$0xff]  ;;  %v756_v14 = vld [vmem:[%s2524_s20 + $0x50] sm:$0xff] }
  0x5a   : > { %763 = vmatpush.xpose.msra.mxu2 %v760_v1  ;;  %v2568_v15 = vld [vmem:[%s2518_s11 + $0x50] sm:$0xff]  ;;  %v531_v16 = vld [vmem:[%s2511_s18 + $0x58] sm:$0xff]  ;;  %v755_v17 = vld [vmem:[%s2524_s20 + $0x48] sm:$0xff] }
  0x5b   : > { %650 = vmatpush.xpose.msra.mxu1 %v2544_v3  ;;  %v2574_v18 = vld [vmem:[%s2518_s11 + $0x48] sm:$0xff]  ;;  %v530_v19 = vld [vmem:[%s2511_s18 + $0x50] sm:$0xff]  ;;  %v754_v20 = vld [vmem:[%s2524_s20 + $0x40] sm:$0xff] }
  0x5c   : > { %537 = vmatpush.xpose.msra.mxu0 %v534_v7  ;;  %1715 = vmatpush.xpose.msra.mxu3 %v534_v7  ;;  %v2580_v21 = vld [vmem:[%s2518_s11 + $0x40] sm:$0xff]  ;;  %v529_v22 = vld [vmem:[%s2511_s18 + $0x48] sm:$0xff]  ;;  %v753_v23 = vld [vmem:[%s2524_s20 + $0x38] sm:$0xff] }
  0x5d   : > { %v2586_v24 = vld [vmem:[%s2518_s11 + $0x38] sm:$0xff]  ;;  %v528_v25 = vld [vmem:[%s2511_s18 + $0x40] sm:$0xff]  ;;  %v752_v26 = vld [vmem:[%s2524_s20 + $0x30] sm:$0xff] }
  0x5e   : > { %764 = vmatpush.xpose.msra.mxu2 %v759_v5  ;;  %v527_v27 = vld [vmem:[%s2511_s18 + $0x38] sm:$0xff]  ;;  %v2593_v28 = vld [vmem:[%s2518_s11 + $0x30] sm:$0xff]  ;;  %v751_v29 = vld [vmem:[%s2524_s20 + $0x28] sm:$0xff] }
  0x5f   : > { %651 = vmatpush.xpose.msra.mxu1 %v2550_v6  ;;  %v2598_v30 = vld [vmem:[%s2518_s11 + $0x28] sm:$0xff]  ;;  %v526_v31 = vld [vmem:[%s2511_s18 + $0x30] sm:$0xff]  ;;  %v750_v32 = vld [vmem:[%s2524_s20 + $0x20] sm:$0xff] }
  0x60   : > { %538 = vmatpush.xpose.msra.mxu0 %v533_v10  ;;  %1716 = vmatpush.xpose.msra.mxu3 %v533_v10  ;;  %v525_v33 = vld [vmem:[%s2511_s18 + $0x28] sm:$0xff]  ;;  %v2605_v34 = vld [vmem:[%s2518_s11 + $0x20] sm:$0xff]  ;;  %v749_v35 = vld [vmem:[%s2524_s20 + $0x18] sm:$0xff] }
  0x61   : > { %v2610_v36 = vld [vmem:[%s2518_s11 + $0x18] sm:$0xff]  ;;  %v524_v37 = vld [vmem:[%s2511_s18 + $0x20] sm:$0xff]  ;;  %v748_v38 = vld [vmem:[%s2524_s20 + $0x10] sm:$0xff] }
  0x62   : > { %765 = vmatpush.xpose.msra.mxu2 %v758_v8  ;;  %v523_v39 = vld [vmem:[%s2511_s18 + $0x18] sm:$0xff]  ;;  %v2617_v40 = vld [vmem:[%s2518_s11 + $0x10] sm:$0xff]  ;;  %v747_v41 = vld [vmem:[%s2524_s20 + $0x8] sm:$0xff] }
  0x63   : > { %652 = vmatpush.xpose.msra.mxu1 %v2556_v9  ;;  %v2622_v42 = vld [vmem:[%s2518_s11 + $0x8] sm:$0xff]  ;;  %v522_v43 = vld [vmem:[%s2511_s18 + $0x10] sm:$0xff]  ;;  %v746_v44 = vld [vmem:[%s2524_s20] sm:$0xff] }
  0x64   : > { %539 = vmatpush.xpose.msra.mxu0 %v532_v13  ;;  %1717 = vmatpush.xpose.msra.mxu3 %v532_v13  ;;  %v521_v45 = vld [vmem:[%s2511_s18 + $0x8] sm:$0xff]  ;;  %v2629_v46 = vld [vmem:[%s2518_s11] sm:$0xff]  ;;  %v732_v54 = vld [vmem:[#allocation15 + $0x10] sm:$0xff] }
  0x65   : > { %v730_v47 = vld [vmem:[#allocation15] sm:$0xff]  ;;  %v731_v51 = vld [vmem:[#allocation15 + $0x8] sm:$0xff]  ;;  %v619_v55 = vld [vmem:[#allocation14 + $0x10] sm:$0xff] }
  0x66   : > { %766 = vmatpush.xpose.msra.mxu2 %v757_v11  ;;  %v617_v48 = vld [vmem:[#allocation14] sm:$0xff]  ;;  %v618_v52 = vld [vmem:[#allocation14 + $0x8] sm:$0xff]  ;;  %v506_v56 = vld [vmem:[#allocation12 + $0x10] sm:$0xff] }
  0x67   : > { %653 = vmatpush.xpose.msra.mxu1 %v2562_v12  ;;  %v520_v49 = vld [vmem:[%s2511_s18] sm:$0xff]  ;;  %v505_v53 = vld [vmem:[#allocation12 + $0x8] sm:$0xff]  ;;  %v733_v57 = vld [vmem:[#allocation15 + $0x18] sm:$0xff] }
  0x68   : > { %540 = vmatpush.xpose.msra.mxu0 %v531_v16  ;;  %1718 = vmatpush.xpose.msra.mxu3 %v531_v16  ;;  %v504_v50 = vld [vmem:[#allocation12] sm:$0xff]  ;;  %v620_v58 = vld [vmem:[#allocation14 + $0x18] sm:$0xff]  ;;  %v735_v0 = vld [vmem:[#allocation15 + $0x28] sm:$0xff] }
  0x69   : > { %v507_v59 = vld [vmem:[#allocation12 + $0x18] sm:$0xff]  ;;  %v734_v60 = vld [vmem:[#allocation15 + $0x20] sm:$0xff]  ;;  %v622_v1 = vld [vmem:[#allocation14 + $0x28] sm:$0xff] }
  0x6a   : > { %767 = vmatpush.xpose.msra.mxu2 %v756_v14  ;;  %v621_v61 = vld [vmem:[#allocation14 + $0x20] sm:$0xff]  ;;  %v736_v4 = vld [vmem:[#allocation15 + $0x30] sm:$0xff]  ;;  %v737_v8 = vld [vmem:[#allocation15 + $0x38] sm:$0xff] }
  0x6b   : > { %654 = vmatpush.xpose.msra.mxu1 %v2568_v15  ;;  %v516_v62 = vld [vmem:[#allocation12 + $0x60] sm:$0xff]  ;;  %v623_v5 = vld [vmem:[#allocation14 + $0x30] sm:$0xff]  ;;  %v519_v10 = vld [vmem:[#allocation12 + $0x78] sm:$0xff] }
  0x6c   : > { %541 = vmatpush.xpose.msra.mxu0 %v530_v19  ;;  %1719 = vmatpush.xpose.msra.mxu3 %v530_v19  ;;  %v508_v63 = vld [vmem:[#allocation12 + $0x20] sm:$0xff]  ;;  %v510_v7 = vld [vmem:[#allocation12 + $0x30] sm:$0xff]  ;;  %v511_v11 = vld [vmem:[#allocation12 + $0x38] sm:$0xff] }
  0x6d   : > { %v625_v13 = vld [vmem:[#allocation14 + $0x40] sm:$0xff]  ;;  %v630_v14 = vld [vmem:[#allocation14 + $0x68] sm:$0xff] }
  0x6e   : > { %768 = vmatpush.xpose.msra.mxu2 %v755_v17  ;;  %v739_v16 = vld [vmem:[#allocation15 + $0x48] sm:$0xff] }
  0x6f   : > { %655 = vmatpush.xpose.msra.mxu1 %v2574_v18  ;;  %v626_v17 = vld [vmem:[#allocation14 + $0x48] sm:$0xff] }
  0x70   : > { %542 = vmatpush.xpose.msra.mxu0 %v529_v22  ;;  %1720 = vmatpush.xpose.msra.mxu3 %v529_v22  ;;  %v513_v19 = vld [vmem:[#allocation12 + $0x48] sm:$0xff]  ;;  %v632_v22 = vld [vmem:[#allocation14 + $0x78] sm:$0xff] }
  0x72   : > { %769 = vmatpush.xpose.msra.mxu2 %v754_v20  ;;  %v740_v20 = vld [vmem:[#allocation15 + $0x50] sm:$0xff] }
  0x73   : > { %656 = vmatpush.xpose.msra.mxu1 %v2580_v21 }
  0x74   : > { %543 = vmatpush.xpose.msra.mxu0 %v528_v25  ;;  %1721 = vmatpush.xpose.msra.mxu3 %v528_v25  ;;  %v628_v25 = vld [vmem:[#allocation14 + $0x58] sm:$0xff] }
  0x76   : > { %770 = vmatpush.xpose.msra.mxu2 %v753_v23  ;;  %v514_v23 = vld [vmem:[#allocation12 + $0x50] sm:$0xff] }
  0x77   : > { %657 = vmatpush.xpose.msra.mxu1 %v2586_v24 }
  0x78   : > { %544 = vmatpush.xpose.msra.mxu0 %v527_v27  ;;  %1722 = vmatpush.xpose.msra.mxu3 %v527_v27  ;;  %v742_v27 = vld [vmem:[#allocation15 + $0x60] sm:$0xff] }
  0x7a   : > { %771 = vmatpush.xpose.msra.mxu2 %v752_v26  ;;  %v515_v26 = vld [vmem:[#allocation12 + $0x58] sm:$0xff] }
  0x7b   : > { %658 = vmatpush.xpose.msra.mxu1 %v2593_v28 }
  0x7c   : > { %545 = vmatpush.xpose.msra.mxu0 %v526_v31  ;;  %1723 = vmatpush.xpose.msra.mxu3 %v526_v31  ;;  %v745_v31 = vld [vmem:[#allocation15 + $0x78] sm:$0xff] }
  0x7e   : > { %772 = vmatpush.xpose.msra.mxu2 %v751_v29  ;;  %v743_v29 = vld [vmem:[#allocation15 + $0x68] sm:$0xff] }
  0x7f   : > { %659 = vmatpush.xpose.msra.mxu1 %v2598_v30 }
  0x80   : > { %546 = vmatpush.xpose.msra.mxu0 %v525_v33  ;;  %1724 = vmatpush.xpose.msra.mxu3 %v525_v33 }
  0x82   : > { %773 = vmatpush.xpose.msra.mxu2 %v750_v32 }
  0x83   : > { %660 = vmatpush.xpose.msra.mxu1 %v2605_v34 }
  0x84   : > { %547 = vmatpush.xpose.msra.mxu0 %v524_v37  ;;  %1725 = vmatpush.xpose.msra.mxu3 %v524_v37 }
  0x86   : > { %774 = vmatpush.xpose.msra.mxu2 %v749_v35 }
  0x87   : > { %661 = vmatpush.xpose.msra.mxu1 %v2610_v36 }
  0x88   : > { %548 = vmatpush.xpose.msra.mxu0 %v523_v39  ;;  %1726 = vmatpush.xpose.msra.mxu3 %v523_v39 }
  0x8a   : > { %775 = vmatpush.xpose.msra.mxu2 %v748_v38 }
  0x8b   : > { %662 = vmatpush.xpose.msra.mxu1 %v2617_v40 }
  0x8c   : > { %549 = vmatpush.xpose.msra.mxu0 %v522_v43  ;;  %1727 = vmatpush.xpose.msra.mxu3 %v522_v43 }
  0x8e   : > { %776 = vmatpush.xpose.msra.mxu2 %v747_v41 }
  0x8f   : > { %663 = vmatpush.xpose.msra.mxu1 %v2622_v42 }
  0x90   : > { %550 = vmatpush.xpose.msra.mxu0 %v521_v45  ;;  %1728 = vmatpush.xpose.msra.mxu3 %v521_v45 }
  0x92   : > { %777 = vmatpush.xpose.msra.mxu2 %v746_v44 }
  0x93   : > { %664 = vmatpush.xpose.msra.mxu1 %v2629_v46 }
  0x94   : > { %551 = vmatpush.xpose.msra.mxu0 %v520_v49  ;;  %1729 = vmatpush.xpose.msra.mxu3 %v520_v49 }
  0x95   : > { %778 = vmatmul.f32.vlgmr.msra.gmra.mxu2 %v730_v47 }
  0x96   : > { %665 = vmatmul.f32.vlgmr.msra.gmra.mxu1 %v617_v48 }
  0x97   : > { %552 = vmatmul.f32.vlgmr.msra.gmra.mxu0 %v504_v50  ;;  %588 = vmatmul.f32.vlgmr.msra.gmra.mxu3 %v516_v62 }
  0x98   : > { %1730 = vmatpush.xpose.msrb.mxu3 %v2540_v2  ;;  %v517_v2 = vld [vmem:[#allocation12 + $0x68] sm:$0xff] }
  0x9c   : > { %1731 = vmatpush.xpose.msrb.mxu3 %v2544_v3  ;;  %v509_v3 = vld [vmem:[#allocation12 + $0x28] sm:$0xff] }
  0x9d   : > { %781 = vmatmul.f32.gmra.mxu2 %v731_v51 }
  0x9e   : > { %668 = vmatmul.f32.gmra.mxu1 %v618_v52 }
  0x9f   : > { %555 = vmatmul.f32.gmra.mxu0 %v505_v53  ;;  %591 = vmatmul.f32.gmra.mxu3 %v517_v2 }
  0xa0   : > { %1732 = vmatpush.xpose.msrb.mxu3 %v2550_v6  ;;  %v518_v6 = vld [vmem:[#allocation12 + $0x70] sm:$0xff] }
  0xa4   : > { %1733 = vmatpush.xpose.msrb.mxu3 %v2556_v9  ;;  %v624_v9 = vld [vmem:[#allocation14 + $0x38] sm:$0xff] }
  0xa5   : > { %784 = vmatmul.f32.gmra.mxu2 %v732_v54 }
  0xa6   : > { %671 = vmatmul.f32.gmra.mxu1 %v619_v55 }
  0xa7   : > { %558 = vmatmul.f32.gmra.mxu0 %v506_v56  ;;  %594 = vmatmul.f32.gmra.mxu3 %v518_v6 }
  0xa8   : > { %1734 = vmatpush.xpose.msrb.mxu3 %v2562_v12  ;;  %v738_v12 = vld [vmem:[#allocation15 + $0x40] sm:$0xff] }
  0xac   : > { %1735 = vmatpush.xpose.msrb.mxu3 %v2568_v15  ;;  %v512_v15 = vld [vmem:[#allocation12 + $0x40] sm:$0xff] }
  0xad   : > { %787 = vmatmul.f32.gmra.mxu2 %v733_v57 }
  0xae   : > { %674 = vmatmul.f32.gmra.mxu1 %v620_v58 }
  0xaf   : > { %561 = vmatmul.f32.gmra.mxu0 %v507_v59  ;;  %597 = vmatmul.f32.gmra.mxu3 %v519_v10 }
  0xb0   : > { %1736 = vmatpush.xpose.msrb.mxu3 %v2574_v18  ;;  %v631_v18 = vld [vmem:[#allocation14 + $0x70] sm:$0xff] }
  0xb4   : > { %1737 = vmatpush.xpose.msrb.mxu3 %v2580_v21  ;;  %v627_v21 = vld [vmem:[#allocation14 + $0x50] sm:$0xff] }
  0xb5   : > { %790 = vmatmul.f32.gmra.mxu2 %v734_v60 }
  0xb6   : > { %677 = vmatmul.f32.gmra.mxu1 %v621_v61 }
  0xb7   : > { %564 = vmatmul.f32.gmra.mxu0 %v508_v63 }
  0xb8   : > { %1738 = vmatpush.xpose.msrb.mxu3 %v2586_v24  ;;  %v741_v24 = vld [vmem:[#allocation15 + $0x58] sm:$0xff] }
  0xbc   : > { %1739 = vmatpush.xpose.msrb.mxu3 %v2593_v28  ;;  %v629_v28 = vld [vmem:[#allocation14 + $0x60] sm:$0xff] }
  0xbd   : > { %793 = vmatmul.f32.gmra.mxu2 %v735_v0 }
  0xbe   : > { %680 = vmatmul.f32.gmra.mxu1 %v622_v1 }
  0xbf   : > { %567 = vmatmul.f32.gmra.mxu0 %v509_v3 }
  0xc0   : > { %1740 = vmatpush.xpose.msrb.mxu3 %v2598_v30  ;;  %v744_v30 = vld [vmem:[#allocation15 + $0x70] sm:$0xff] }
  0xc4   : > { %1741 = vmatpush.xpose.msrb.mxu3 %v2605_v34 }
  0xc5   : > { %796 = vmatmul.f32.gmra.mxu2 %v736_v4 }
  0xc6   : > { %683 = vmatmul.f32.gmra.mxu1 %v623_v5 }
  0xc7   : > { %570 = vmatmul.f32.gmra.mxu0 %v510_v7 }
  0xc8   : > { %1742 = vmatpush.xpose.msrb.mxu3 %v2610_v36 }
  0xcc   : > { %1743 = vmatpush.xpose.msrb.mxu3 %v2617_v40 }
  0xcd   : > { %799 = vmatmul.f32.gmra.mxu2 %v737_v8 }
  0xce   : > { %686 = vmatmul.f32.gmra.mxu1 %v624_v9 }
  0xcf   : > { %573 = vmatmul.f32.gmra.mxu0 %v511_v11  ;;  %v2280_v11 = vmov 0.0  }
  0xd0   : > { %1744 = vmatpush.xpose.msrb.mxu3 %v2622_v42  ;;  %843 = vst [vmem:[#allocation5 + $0x30] sm:$0xff] %v2280_v11 }
  0xd1   : > { %844 = vst [vmem:[#allocation5] sm:$0xff] %v2280_v11 }
  0xd2   : > { %845 = vst [vmem:[#allocation5 + $0x58] sm:$0xff] %v2280_v11 }
  0xd3   : > { %846 = vst [vmem:[#allocation5 + $0x18] sm:$0xff] %v2280_v11 }
  0xd4   : > { %1745 = vmatpush.xpose.msrb.mxu3 %v2629_v46  ;;  %847 = vst [vmem:[#allocation5 + $0x50] sm:$0xff] %v2280_v11 }
  0xd5   : > { %802 = vmatmul.f32.gmra.mxu2 %v738_v12  ;;  %848 = vst [vmem:[#allocation5 + $0x68] sm:$0xff] %v2280_v11 }
  0xd6   : > { %689 = vmatmul.f32.gmra.mxu1 %v625_v13  ;;  %849 = vst [vmem:[#allocation5 + $0x8] sm:$0xff] %v2280_v11 }
  0xd7   : > { %704 = vmatmul.f32.vlgmr.msrb.gmra.mxu3 %v630_v14  ;;  %576 = vmatmul.f32.gmra.mxu0 %v512_v15  ;;  %850 = vst [vmem:[#allocation5 + $0x48] sm:$0xff] %v2280_v11 }
  0xd8   : > { %851 = vst [vmem:[#allocation5 + $0x40] sm:$0xff] %v2280_v11 }
  0xd9   : > { %852 = vst [vmem:[#allocation5 + $0x20] sm:$0xff] %v2280_v11 }
  0xda   : > { %853 = vst [vmem:[#allocation5 + $0x10] sm:$0xff] %v2280_v11 }
  0xdb   : > { %854 = vst [vmem:[#allocation5 + $0x38] sm:$0xff] %v2280_v11 }
  0xdc   : > { %855 = vst [vmem:[#allocation5 + $0x60] sm:$0xff] %v2280_v11 }
  0xdd   : > { %805 = vmatmul.f32.gmra.mxu2 %v739_v16  ;;  %856 = vst [vmem:[#allocation5 + $0x70] sm:$0xff] %v2280_v11 }
  0xde   : > { %692 = vmatmul.f32.gmra.mxu1 %v626_v17  ;;  %857 = vst [vmem:[#allocation5 + $0x78] sm:$0xff] %v2280_v11 }
  0xdf   : > { %707 = vmatmul.f32.gmra.mxu3 %v631_v18  ;;  %579 = vmatmul.f32.gmra.mxu0 %v513_v19  ;;  %858 = vst [vmem:[#allocation5 + $0x28] sm:$0xff] %v2280_v11 }
  0xe5   : > { %808 = vmatmul.f32.gmra.mxu2 %v740_v20 }
  0xe6   : > { %695 = vmatmul.f32.gmra.mxu1 %v627_v21 }
  0xe7   : > { %710 = vmatmul.f32.gmra.mxu3 %v632_v22  ;;  %582 = vmatmul.f32.gmra.mxu0 %v514_v23 }
  0xed   : > { %811 = vmatmul.f32.gmra.mxu2 %v741_v24 }
  0xee   : > { %698 = vmatmul.f32.gmra.mxu1 %v628_v25 }
  0xef   : > { %585 = vmatmul.f32.gmra.mxu0 %v515_v26 }
  0xf5   : > { %814 = vmatmul.f32.gmra.mxu2 %v742_v27 }
  0xf6   : > { %701 = vmatmul.f32.gmra.mxu1 %v629_v28 }
  0xfd   : > { %817 = vmatmul.f32.gmra.mxu2 %v743_v29 }
 0x105   : > { %820 = vmatmul.f32.gmra.mxu2 %v744_v30 }
 0x10d   : > { %823 = vmatmul.f32.gmra.mxu2 %v745_v31 }
 0x113   : > { %v666_v32 = vpop.f32.mrf.mxu1 }
 0x114   : > { %714 = vst [vmem:[#allocation3] sm:$0xff] %v666_v32  ;;  %v553_v33 = vpop.f32.mrf.mxu0 }
 0x115   : > { %601 = vst [vmem:[#allocation2] sm:$0xff] %v553_v33 }
 0x118   : > { %v779_v34 = vpop.f32.mrf.mxu2 }
 0x119   : > { %827 = vst [vmem:[#allocation4] sm:$0xff] %v779_v34 }
 0x11a   : > { %v589_v47 = vpop.f32.mrf.mxu3 }
 0x11b   : > { %v669_v35 = vpop.f32.mrf.mxu1  ;;  %613 = vst [vmem:[#allocation2 + $0x60] sm:$0xff] %v589_v47 }
 0x11c   : > { %715 = vst [vmem:[#allocation3 + $0x8] sm:$0xff] %v669_v35  ;;  %v556_v36 = vpop.f32.mrf.mxu0 }
 0x11d   : > { %602 = vst [vmem:[#allocation2 + $0x8] sm:$0xff] %v556_v36 }
 0x120   : > { %v782_v37 = vpop.f32.mrf.mxu2 }
 0x121   : > { %828 = vst [vmem:[#allocation4 + $0x8] sm:$0xff] %v782_v37 }
 0x122   : > { %v592_v51 = vpop.f32.mrf.mxu3 }
 0x123   : > { %v672_v38 = vpop.f32.mrf.mxu1  ;;  %614 = vst [vmem:[#allocation2 + $0x68] sm:$0xff] %v592_v51 }
 0x124   : > { %716 = vst [vmem:[#allocation3 + $0x10] sm:$0xff] %v672_v38  ;;  %v559_v39 = vpop.f32.mrf.mxu0 }
 0x125   : > { %603 = vst [vmem:[#allocation2 + $0x10] sm:$0xff] %v559_v39 }
 0x128   : > { %v785_v40 = vpop.f32.mrf.mxu2 }
 0x129   : > { %829 = vst [vmem:[#allocation4 + $0x10] sm:$0xff] %v785_v40 }
 0x12a   : > { %v595_v55 = vpop.f32.mrf.mxu3 }
 0x12b   : > { %v675_v41 = vpop.f32.mrf.mxu1  ;;  %615 = vst [vmem:[#allocation2 + $0x70] sm:$0xff] %v595_v55 }
 0x12c   : > { %717 = vst [vmem:[#allocation3 + $0x18] sm:$0xff] %v675_v41  ;;  %v562_v42 = vpop.f32.mrf.mxu0 }
 0x12d   : > { %604 = vst [vmem:[#allocation2 + $0x18] sm:$0xff] %v562_v42 }
 0x130   : > { %v788_v43 = vpop.f32.mrf.mxu2 }
 0x131   : > { %830 = vst [vmem:[#allocation4 + $0x18] sm:$0xff] %v788_v43 }
 0x132   : > { %v598_v59 = vpop.f32.mrf.mxu3 }
 0x133   : > { %v678_v44 = vpop.f32.mrf.mxu1  ;;  %616 = vst [vmem:[#allocation2 + $0x78] sm:$0xff] %v598_v59 }
 0x134   : > { %718 = vst [vmem:[#allocation3 + $0x20] sm:$0xff] %v678_v44  ;;  %v565_v45 = vpop.f32.mrf.mxu0 }
 0x135   : > { %605 = vst [vmem:[#allocation2 + $0x20] sm:$0xff] %v565_v45 }
 0x138   : > { %v791_v46 = vpop.f32.mrf.mxu2 }
 0x139   : > { %831 = vst [vmem:[#allocation4 + $0x20] sm:$0xff] %v791_v46 }
 0x13b   : > { %v681_v48 = vpop.f32.mrf.mxu1 }
 0x13c   : > { %719 = vst [vmem:[#allocation3 + $0x28] sm:$0xff] %v681_v48  ;;  %v568_v49 = vpop.f32.mrf.mxu0 }
 0x13d   : > { %606 = vst [vmem:[#allocation2 + $0x28] sm:$0xff] %v568_v49 }
 0x140   : > { %v794_v50 = vpop.f32.mrf.mxu2 }
 0x141   : > { %832 = vst [vmem:[#allocation4 + $0x28] sm:$0xff] %v794_v50 }
 0x143   : > { %v684_v52 = vpop.f32.mrf.mxu1 }
 0x144   : > { %720 = vst [vmem:[#allocation3 + $0x30] sm:$0xff] %v684_v52  ;;  %v571_v53 = vpop.f32.mrf.mxu0 }
 0x145   : > { %607 = vst [vmem:[#allocation2 + $0x30] sm:$0xff] %v571_v53 }
 0x148   : > { %v797_v54 = vpop.f32.mrf.mxu2 }
 0x149   : > { %833 = vst [vmem:[#allocation4 + $0x30] sm:$0xff] %v797_v54 }
 0x14b   : > { %v687_v56 = vpop.f32.mrf.mxu1 }
 0x14c   : > { %721 = vst [vmem:[#allocation3 + $0x38] sm:$0xff] %v687_v56  ;;  %v574_v57 = vpop.f32.mrf.mxu0 }
 0x14d   : > { %608 = vst [vmem:[#allocation2 + $0x38] sm:$0xff] %v574_v57 }
 0x150   : > { %v800_v58 = vpop.f32.mrf.mxu2 }
 0x151   : > { %834 = vst [vmem:[#allocation4 + $0x38] sm:$0xff] %v800_v58 }
 0x153   : > { %v690_v60 = vpop.f32.mrf.mxu1 }
 0x154   : > { %722 = vst [vmem:[#allocation3 + $0x40] sm:$0xff] %v690_v60  ;;  %v577_v61 = vpop.f32.mrf.mxu0 }
 0x155   : > { %609 = vst [vmem:[#allocation2 + $0x40] sm:$0xff] %v577_v61 }
 0x158   : > { %v803_v62 = vpop.f32.mrf.mxu2 }
 0x159   : > { %835 = vst [vmem:[#allocation4 + $0x40] sm:$0xff] %v803_v62 }
 0x15a   : > { %v705_v63 = vpop.f32.mrf.mxu3 }
 0x15b   : > { %v693_v0 = vpop.f32.mrf.mxu1  ;;  %727 = vst [vmem:[#allocation3 + $0x68] sm:$0xff] %v705_v63 }
 0x15c   : > { %723 = vst [vmem:[#allocation3 + $0x48] sm:$0xff] %v693_v0  ;;  %v580_v1 = vpop.f32.mrf.mxu0 }
 0x15d   : > { %610 = vst [vmem:[#allocation2 + $0x48] sm:$0xff] %v580_v1 }
 0x160   : > { %v806_v2 = vpop.f32.mrf.mxu2 }
 0x161   : > { %836 = vst [vmem:[#allocation4 + $0x48] sm:$0xff] %v806_v2 }
 0x162   : > { %v708_v3 = vpop.f32.mrf.mxu3 }
 0x163   : > { %v696_v4 = vpop.f32.mrf.mxu1  ;;  %728 = vst [vmem:[#allocation3 + $0x70] sm:$0xff] %v708_v3 }
 0x164   : > { %724 = vst [vmem:[#allocation3 + $0x50] sm:$0xff] %v696_v4  ;;  %v583_v5 = vpop.f32.mrf.mxu0 }
 0x165   : > { %611 = vst [vmem:[#allocation2 + $0x50] sm:$0xff] %v583_v5 }
 0x168   : > { %v809_v6 = vpop.f32.mrf.mxu2 }
 0x169   : > { %837 = vst [vmem:[#allocation4 + $0x50] sm:$0xff] %v809_v6 }
 0x16a   : > { %v711_v7 = vpop.f32.mrf.mxu3 }
 0x16b   : > { %v699_v8 = vpop.f32.mrf.mxu1  ;;  %729 = vst [vmem:[#allocation3 + $0x78] sm:$0xff] %v711_v7 }
 0x16c   : > { %725 = vst [vmem:[#allocation3 + $0x58] sm:$0xff] %v699_v8  ;;  %v586_v9 = vpop.f32.mrf.mxu0 }
 0x16d   : > { %612 = vst [vmem:[#allocation2 + $0x58] sm:$0xff] %v586_v9 }
 0x170   : > { %v812_v10 = vpop.f32.mrf.mxu2 }
 0x171   : > { %838 = vst [vmem:[#allocation4 + $0x58] sm:$0xff] %v812_v10 }
 0x173   : > { %v702_v12 = vpop.f32.mrf.mxu1 }
 0x174   : > { %726 = vst [vmem:[#allocation3 + $0x60] sm:$0xff] %v702_v12 }
 0x178   : > { %v815_v13 = vpop.f32.mrf.mxu2 }
 0x179   : > { %839 = vst [vmem:[#allocation4 + $0x60] sm:$0xff] %v815_v13 }
 0x180   : > { %v818_v14 = vpop.f32.mrf.mxu2 }
 0x181   : > { %840 = vst [vmem:[#allocation4 + $0x68] sm:$0xff] %v818_v14 }
 0x188   : > { %v821_v15 = vpop.f32.mrf.mxu2 }
 0x189   : > { %841 = vst [vmem:[#allocation4 + $0x70] sm:$0xff] %v821_v15 }
 0x190   : > { %v824_v16 = vpop.f32.mrf.mxu2 }
 0x191   : > { %842 = vst [vmem:[#allocation4 + $0x78] sm:$0xff] %v824_v16 }
 0x192 PF: > { %s2650_s13 = sshll.u32 %s2256_s30, 4  ;;  %vm901_vm0 = vcmask 130048   ;;  %p1704_p1 = scmp.ne.s32.totalorder %s2256_s30, 7 }
 0x193   : > { %s860_s15 = scalar_lea.vmem [#allocation2], %s2650_s13  ;;  %s863_s14 = scalar_lea.vmem [#allocation3], %s2650_s13 }
 0x194   : > { %v861_v17 = vld [vmem:[%s860_s15] sm:$0xff]  ;;  %v865_v18 = vld [vmem:[%s863_s14 + $0x8] sm:$0xff]  ;;  %s866_s3 = scalar_lea.vmem [#allocation4], %s2650_s13  ;;  %s1224_s22 = scalar_lea.vmem [#allocation17], %s2650_s13 }
 0x195   : > { %869 = vxpose.xlu0.b32.start [1/2] (short) %v861_v17, 128  ;;  %964 = vmatpush.msra.mxu0 %v865_v18  ;;  %v864_v19 = vld [vmem:[%s863_s14] sm:$0xff]  ;;  %v862_v20 = vld [vmem:[%s860_s15 + $0x8] sm:$0xff] }
 0x196   : > { %1746 = vmatpush.msra.mxu3 %v865_v18 }
 0x197   : > { %965 = vmatpush.msra.mxu0 %v864_v19 }
 0x198   : > { %1747 = vmatpush.msra.mxu3 %v864_v19  ;;  %v868_v49 = vld [vmem:[%s866_s3 + $0x8] sm:$0xff]  ;;  %v867_v50 = vld [vmem:[%s866_s3] sm:$0xff] }
 0x199   : > { %1141 = vmatpush.xpose.msra.mxu1 %v868_v49 }
 0x19a   : > { %1748 = vmatpush.xpose.msrb.mxu3 %v868_v49 }
 0x19d   : > { %870 = vxpose.xlu0.b32.end [2/2] (short) %v862_v20, 128  ;;  %1142 = vmatpush.xpose.msra.mxu1 %v867_v50 }
 0x19e   : > { %1749 = vmatpush.xpose.msrb.mxu3 %v867_v50 }
 0x239   : > { %v885_v21 = vpop.trf.xlu0 }
 0x23a   : > { %1672 = vmatmul.msk.f32.vlgmr.msra.gmra.mxu0 %vm901_vm0, %v885_v21 }
 0x241   : > { %v886_v22 = vpop.trf.xlu0 }
 0x242   : > { %1673 = vmatmul.msk.f32.gmra.mxu0 %vm901_vm0, %v886_v22 }
 0x249   : > { %v887_v23 = vpop.trf.xlu0 }
 0x24a   : > { %1674 = vmatmul.msk.f32.gmra.mxu0 %vm901_vm0, %v887_v23 }
 0x251   : > { %v888_v24 = vpop.trf.xlu0 }
 0x252   : > { %1675 = vmatmul.msk.f32.gmra.mxu0 %vm901_vm0, %v888_v24 }
 0x259   : > { %v889_v25 = vpop.trf.xlu0 }
 0x25a   : > { %1676 = vmatmul.msk.f32.gmra.mxu0 %vm901_vm0, %v889_v25 }
 0x261   : > { %v890_v26 = vpop.trf.xlu0 }
 0x262   : > { %1677 = vmatmul.msk.f32.gmra.mxu0 %vm901_vm0, %v890_v26 }
 0x269   : > { %v891_v27 = vpop.trf.xlu0 }
 0x26a   : > { %1678 = vmatmul.msk.f32.gmra.mxu0 %vm901_vm0, %v891_v27 }
 0x271   : > { %v892_v28 = vpop.trf.xlu0 }
 0x272   : > { %1679 = vmatmul.msk.f32.gmra.mxu0 %vm901_vm0, %v892_v28 }
 0x279   : > { %v893_v29 = vpop.trf.xlu0 }
 0x27a   : > { %1680 = vmatmul.msk.f32.gmra.mxu0 %vm901_vm0, %v893_v29 }
 0x281   : > { %v894_v30 = vpop.trf.xlu0 }
 0x282   : > { %1681 = vmatmul.msk.f32.gmra.mxu0 %vm901_vm0, %v894_v30 }
 0x289   : > { %v895_v31 = vpop.trf.xlu0 }
 0x28a   : > { %1682 = vmatmul.msk.f32.gmra.mxu0 %vm901_vm0, %v895_v31 }
 0x291   : > { %v896_v32 = vpop.trf.xlu0 }
 0x292   : > { %1683 = vmatmul.msk.f32.gmra.mxu0 %vm901_vm0, %v896_v32 }
 0x299   : > { %v897_v33 = vpop.trf.xlu0 }
 0x29a   : > { %1684 = vmatmul.msk.f32.gmra.mxu0 %vm901_vm0, %v897_v33 }
 0x2a1   : > { %v898_v34 = vpop.trf.xlu0 }
 0x2a2   : > { %1685 = vmatmul.msk.f32.vlgmr.msra.gmra.mxu3 %vm901_vm0, %v898_v34 }
 0x2a9   : > { %v899_v35 = vpop.trf.xlu0 }
 0x2aa   : > { %1686 = vmatmul.msk.f32.gmra.mxu3 %vm901_vm0, %v899_v35 }
 0x2b1   : > { %v900_v36 = vpop.trf.xlu0 }
 0x2b2   : > { %1687 = vmatmul.msk.f32.gmra.mxu3 %vm901_vm0, %v900_v36 }
 0x2b7   : > { %v967_v37 = vpop.f32.mrf.mxu0 }
 0x2b8   : > { %1015 = vmax.xlane.f32.xlu1 %v967_v37 }
 0x2bf   : > { %v970_v38 = vpop.f32.mrf.mxu0 }
 0x2c0   : > { %1017 = vmax.xlane.f32.xlu1 %v970_v38 }
 0x2c7   : > { %v973_v39 = vpop.f32.mrf.mxu0 }
 0x2c8   : > { %1019 = vmax.xlane.f32.xlu2 %v973_v39 }
 0x2cf   : > { %v976_v40 = vpop.f32.mrf.mxu0 }
 0x2d0   : > { %1021 = vmax.xlane.f32.xlu2 %v976_v40 }
 0x2d7   : > { %v979_v41 = vpop.f32.mrf.mxu0 }
 0x2d8   : > { %1023 = vmax.xlane.f32.xlu0 %v979_v41 }
 0x2df   : > { %v2670_v42 = vpop.f32.mrf.mxu0 }
 0x2e0   : > { %1025 = vmax.xlane.f32.xlu1 %v2670_v42 }
 0x2e7   : > { %v2673_v43 = vpop.f32.mrf.mxu0 }
 0x2e8   : > { %1027 = vmax.xlane.f32.xlu2 %v2673_v43 }
 0x2ef   : > { %v2676_v44 = vpop.f32.mrf.mxu0 }
 0x2f0   : > { %1029 = vmax.xlane.f32.xlu1 %v2676_v44 }
 0x2f7   : > { %v2679_v45 = vpop.f32.mrf.mxu0 }
 0x2f8   : > { %1031 = vmax.xlane.f32.xlu2 %v2679_v45 }
 0x2ff   : > { %v2682_v46 = vpop.f32.mrf.mxu0 }
 0x300   : > { %1033 = vmax.xlane.f32.xlu2 %v2682_v46 }
 0x307   : > { %v2685_v47 = vpop.f32.mrf.mxu0 }
 0x308   : > { %1035 = vmax.xlane.f32.xlu2 %v2685_v47 }
 0x30f   : > { %v2688_v48 = vpop.f32.mrf.mxu0 }
 0x310   : > { %1037 = vmax.xlane.f32.xlu2 %v2688_v48 }
 0x317   : > { %v2692_v51 = vpop.f32.mrf.mxu0 }
 0x318   : > { %1039 = vmax.xlane.f32.xlu1 %v2692_v51 }
 0x325   : > { %v2695_v52 = vpop.f32.mrf.mxu3 }
 0x326   : > { %1041 = vmax.xlane.f32.xlu1 %v2695_v52 }
 0x32b   : > { %v1016_v53 = vpop.xlane.xlu1 %1015 }
 0x32c   : > { %v1047_v54 = vsub.f32 %v967_v37, %v1016_v53 }
 0x32d   : > { %v2698_v55 = vpop.f32.mrf.mxu3 }
 0x32e   : > { %v1063_v56 = vmul.f32 1.442695, %v1047_v54  ;;  %1043 = vmax.xlane.f32.xlu1 %v2698_v55 }
 0x330   : > { %1887 = vpow2.f32 %v1063_v56 }
 0x333   : > { %v1018_v57 = vpop.xlane.xlu1 %1017 }
 0x334   : > { %v1048_v58 = vsub.f32 %v970_v38, %v1018_v57 }
 0x335   : > { %v2701_v59 = vpop.f32.mrf.mxu3 }
 0x336   : > { %v1888_v60 = vpop.eup %1887  ;;  %v1065_v61 = vmul.f32 1.442695, %v1048_v58  ;;  %1045 = vmax.xlane.f32.xlu1 %v2701_v59 }
 0x337   : > { %1143 = vmatmul.f32.vlgmr.msra.gmra.mxu1 %v1888_v60  ;;  %1095 = vadd.xlane.f32.xlu2 %v1888_v60 }
 0x338   : > { %1889 = vpow2.f32 %v1065_v61 }
 0x33b   : > { %v1020_v62 = vpop.xlane.xlu2 %1019 }
 0x33c   : > { %v1049_v63 = vsub.f32 %v973_v39, %v1020_v62 }
 0x33e   : > { %v1890_v0 = vpop.eup %1889  ;;  %v1067_v1 = vmul.f32 1.442695, %v1049_v63 }
 0x33f   : > { %1146 = vmatmul.f32.gmra.mxu1 %v1890_v0  ;;  %1097 = vadd.xlane.f32.xlu1 %v1890_v0 }
 0x340   : > { %1891 = vpow2.f32 %v1067_v1 }
 0x343   : > { %v1022_v2 = vpop.xlane.xlu2 %1021 }
 0x344   : > { %v1050_v3 = vsub.f32 %v976_v40, %v1022_v2 }
 0x346   : > { %v1892_v4 = vpop.eup %1891  ;;  %v1069_v5 = vmul.f32 1.442695, %v1050_v3 }
 0x347   : > { %1149 = vmatmul.f32.gmra.mxu1 %v1892_v4  ;;  %1099 = vadd.xlane.f32.xlu2 %v1892_v4 }
 0x348   : > { %1893 = vpow2.f32 %v1069_v5 }
 0x34b   : > { %v1024_v6 = vpop.xlane.xlu0 %1023 }
 0x34c   : > { %v1051_v7 = vsub.f32 %v979_v41, %v1024_v6 }
 0x34e   : > { %v1894_v8 = vpop.eup %1893  ;;  %v1071_v9 = vmul.f32 1.442695, %v1051_v7 }
 0x34f   : > { %1152 = vmatmul.f32.gmra.mxu1 %v1894_v8  ;;  %1101 = vadd.xlane.f32.xlu1 %v1894_v8 }
 0x350   : > { %1895 = vpow2.f32 %v1071_v9 }
 0x353   : > { %v1026_v10 = vpop.xlane.xlu1 %1025 }
 0x354   : > { %v1052_v11 = vsub.f32 %v2670_v42, %v1026_v10  ;;  %v1226_v42 = vld [vmem:[%s1224_s22 + $0x8] sm:$0xff] }
 0x355   : > { %1305 = vmatpush.msra.mxu2 %v1226_v42  ;;  %1750 = vmatpush.msra.mxu3 %v1226_v42 }
 0x356   : > { %v1896_v12 = vpop.eup %1895  ;;  %v1073_v13 = vmul.f32 1.442695, %v1052_v11 }
 0x357   : > { %1103 = vadd.xlane.f32.xlu2 %v1896_v12  ;;  %1155 = vmatmul.f32.gmra.mxu1 %v1896_v12 }
 0x358   : > { %1897 = vpow2.f32 %v1073_v13 }
 0x35b   : > { %v1028_v14 = vpop.xlane.xlu2 %1027 }
 0x35c   : > { %v1053_v15 = vsub.f32 %v2673_v43, %v1028_v14  ;;  %v1225_v43 = vld [vmem:[%s1224_s22] sm:$0xff] }
 0x35d   : > { %1306 = vmatpush.msra.mxu2 %v1225_v43  ;;  %1751 = vmatpush.msra.mxu3 %v1225_v43 }
 0x35e   : > { %v1898_v16 = vpop.eup %1897  ;;  %v1075_v17 = vmul.f32 1.442695, %v1053_v15 }
 0x35f   : > { %1105 = vadd.xlane.f32.xlu1 %v1898_v16  ;;  %1158 = vmatmul.f32.gmra.mxu1 %v1898_v16 }
 0x360   : > { %1899 = vpow2.f32 %v1075_v17 }
 0x363   : > { %v1030_v18 = vpop.xlane.xlu1 %1029 }
 0x364   : > { %v1054_v19 = vsub.f32 %v2676_v44, %v1030_v18 }
 0x366   : > { %v1900_v20 = vpop.eup %1899  ;;  %v1077_v21 = vmul.f32 1.442695, %v1054_v19 }
 0x367   : > { %1107 = vadd.xlane.f32.xlu2 %v1900_v20  ;;  %1161 = vmatmul.f32.gmra.mxu1 %v1900_v20 }
 0x368   : > { %1901 = vpow2.f32 %v1077_v21 }
 0x36b   : > { %v1032_v22 = vpop.xlane.xlu2 %1031 }
 0x36c   : > { %v1055_v23 = vsub.f32 %v2679_v45, %v1032_v22 }
 0x36e   : > { %v1902_v24 = vpop.eup %1901  ;;  %v1079_v25 = vmul.f32 1.442695, %v1055_v23 }
 0x36f   : > { %1109 = vadd.xlane.f32.xlu1 %v1902_v24  ;;  %1164 = vmatmul.f32.gmra.mxu1 %v1902_v24 }
 0x370   : > { %1903 = vpow2.f32 %v1079_v25 }
 0x373   : > { %v1034_v26 = vpop.xlane.xlu2 %1033 }
 0x374   : > { %v1056_v27 = vsub.f32 %v2682_v46, %v1034_v26 }
 0x376   : > { %v1904_v28 = vpop.eup %1903  ;;  %v1081_v29 = vmul.f32 1.442695, %v1056_v27 }
 0x377   : > { %1111 = vadd.xlane.f32.xlu2 %v1904_v28  ;;  %1167 = vmatmul.f32.gmra.mxu1 %v1904_v28 }
 0x378   : > { %1905 = vpow2.f32 %v1081_v29 }
 0x37b   : > { %v1036_v30 = vpop.xlane.xlu2 %1035 }
 0x37c   : > { %v1057_v31 = vsub.f32 %v2685_v47, %v1036_v30 }
 0x37e   : > { %v1906_v32 = vpop.eup %1905  ;;  %v1083_v33 = vmul.f32 1.442695, %v1057_v31 }
 0x37f   : > { %1113 = vadd.xlane.f32.xlu1 %v1906_v32  ;;  %1170 = vmatmul.f32.gmra.mxu1 %v1906_v32 }
 0x380   : > { %1907 = vpow2.f32 %v1083_v33 }
 0x383   : > { %v1038_v34 = vpop.xlane.xlu2 %1037 }
 0x384   : > { %v1058_v35 = vsub.f32 %v2688_v48, %v1038_v34 }
 0x386   : > { %v1908_v36 = vpop.eup %1907  ;;  %v1085_v37 = vmul.f32 1.442695, %v1058_v35 }
 0x387   : > { %1115 = vadd.xlane.f32.xlu2 %v1908_v36  ;;  %1173 = vmatmul.f32.gmra.mxu1 %v1908_v36 }
 0x388   : > { %1909 = vpow2.f32 %v1085_v37 }
 0x38b   : > { %v1040_v38 = vpop.xlane.xlu1 %1039 }
 0x38c   : > { %v1059_v39 = vsub.f32 %v2692_v51, %v1040_v38 }
 0x38e   : > { %v1910_v40 = vpop.eup %1909  ;;  %v1087_v41 = vmul.f32 1.442695, %v1059_v39 }
 0x38f   : > { %1117 = vadd.xlane.f32.xlu2 %v1910_v40  ;;  %1176 = vmatmul.f32.gmra.mxu1 %v1910_v40 }
 0x390   : > { %1911 = vpow2.f32 %v1087_v41 }
 0x396   : > { %v1912_v44 = vpop.eup %1911 }
 0x397   : > { %1179 = vmatmul.f32.vlgmr.msrb.gmra.mxu3 %v1912_v44  ;;  %1119 = vadd.xlane.f32.xlu2 %v1912_v44 }
 0x399   : > { %v1042_v45 = vpop.xlane.xlu1 %1041 }
 0x39a   : > { %v1060_v46 = vsub.f32 %v2695_v52, %v1042_v45 }
 0x39c   : > { %v1089_v47 = vmul.f32 1.442695, %v1060_v46 }
 0x39e   : > { %1913 = vpow2.f32 %v1089_v47 }
 0x3a1   : > { %v1044_v48 = vpop.xlane.xlu1 %1043 }
 0x3a2   : > { %v1061_v49 = vsub.f32 %v2698_v55, %v1044_v48 }
 0x3a4   : > { %v1914_v50 = vpop.eup %1913  ;;  %v1091_v51 = vmul.f32 1.442695, %v1061_v49 }
 0x3a5   : > { %1182 = vmatmul.f32.gmra.mxu3 %v1914_v50  ;;  %1121 = vadd.xlane.f32.xlu1 %v1914_v50 }
 0x3a6   : > { %1915 = vpow2.f32 %v1091_v51 }
 0x3a9   : > { %v1046_v53 = vpop.xlane.xlu1 %1045 }
 0x3aa   : > { %v1062_v54 = vsub.f32 %v2701_v59, %v1046_v53  ;;  %v1096_v56 = vpop.xlane.xlu2 %1095 }
 0x3ab   : > { %1917 = vrcp.f32 %v1096_v56 }
 0x3ac   : > { %v1916_v57 = vpop.eup %1915  ;;  %v1093_v58 = vmul.f32 1.442695, %v1062_v54 }
 0x3ad   : > { %1185 = vmatmul.f32.gmra.mxu3 %v1916_v57  ;;  %1123 = vadd.xlane.f32.xlu1 %v1916_v57 }
 0x3ae   : > { %1919 = vpow2.f32 %v1093_v58  ;;  %v1227_v58 = vld [vmem:[#allocation5 + $0x30] sm:$0xff] }
 0x3b1   : > { %v1918_v52 = vpop.eup %1917 }
 0x3b2   : > { %v1098_v60 = vpop.xlane.xlu1 %1097 }
 0x3b3   : > { %1921 = vrcp.f32 %v1098_v60 }
 0x3b4   : > { %v1920_v61 = vpop.eup %1919  ;;  %v1144_v62 = vpop.f32.mrf.mxu1 }
 0x3b5   : > { %v1208_v55 = vmul.f32 %v1918_v52, %v1144_v62  ;;  %1125 = vadd.xlane.f32.xlu1 %v1920_v61  ;;  %1188 = vmatmul.f32.gmra.mxu3 %v1920_v61  ;;  %v1228_v62 = vld [vmem:[#allocation5] sm:$0xff] }
 0x3b7   : > { %1688 = vmatmul.msk.f32.vlgmr.msra.gmra.mxu2 %vm901_vm0, %v1208_v55 }
 0x3b9   : > { %v1922_v0 = vpop.eup %1921 }
 0x3ba   : > { %v1100_v63 = vpop.xlane.xlu2 %1099 }
 0x3bb   : > { %1923 = vrcp.f32 %v1100_v63 }
 0x3bc   : > { %v1147_v59 = vpop.f32.mrf.mxu1 }
 0x3bd   : > { %v1209_v1 = vmul.f32 %v1922_v0, %v1147_v59  ;;  %v1229_v0 = vld [vmem:[#allocation5 + $0x58] sm:$0xff] }
 0x3bf   : > { %1689 = vmatmul.msk.f32.gmra.mxu2 %vm901_vm0, %v1209_v1 }
 0x3c1   : > { %v1924_v3 = vpop.eup %1923 }
 0x3c2   : > { %v1102_v2 = vpop.xlane.xlu1 %1101 }
 0x3c3   : > { %1925 = vrcp.f32 %v1102_v2  ;;  %v1230_v2 = vld [vmem:[#allocation5 + $0x18] sm:$0xff] }
 0x3c4   : > { %v1150_v4 = vpop.f32.mrf.mxu1 }
 0x3c5   : > { %v1210_v5 = vmul.f32 %v1924_v3, %v1150_v4 }
 0x3c7   : > { %1690 = vmatmul.msk.f32.gmra.mxu2 %vm901_vm0, %v1210_v5  ;;  %v1231_v5 = vld [vmem:[#allocation5 + $0x50] sm:$0xff] }
 0x3c9   : > { %v1926_v7 = vpop.eup %1925 }
 0x3ca   : > { %v1104_v6 = vpop.xlane.xlu2 %1103 }
 0x3cb   : > { %1927 = vrcp.f32 %v1104_v6 }
 0x3cc   : > { %v1153_v8 = vpop.f32.mrf.mxu1 }
 0x3cd   : > { %v1211_v9 = vmul.f32 %v1926_v7, %v1153_v8  ;;  %v1232_v8 = vld [vmem:[#allocation5 + $0x68] sm:$0xff] }
 0x3cf   : > { %1691 = vmatmul.msk.f32.gmra.mxu2 %vm901_vm0, %v1211_v9 }
 0x3d1   : > { %v1928_v11 = vpop.eup %1927 }
 0x3d2   : > { %v1106_v10 = vpop.xlane.xlu1 %1105 }
 0x3d3   : > { %1929 = vrcp.f32 %v1106_v10 }
 0x3d4   : > { %v1156_v12 = vpop.f32.mrf.mxu1 }
 0x3d5   : > { %v1212_v13 = vmul.f32 %v1928_v11, %v1156_v12  ;;  %v1233_v11 = vld [vmem:[#allocation5 + $0x8] sm:$0xff] }
 0x3d7   : > { %1692 = vmatmul.msk.f32.gmra.mxu2 %vm901_vm0, %v1212_v13 }
 0x3d9   : > { %v1930_v15 = vpop.eup %1929 }
 0x3da   : > { %v1108_v14 = vpop.xlane.xlu2 %1107 }
 0x3db   : > { %1931 = vrcp.f32 %v1108_v14  ;;  %v1234_v14 = vld [vmem:[#allocation5 + $0x48] sm:$0xff] }
 0x3dc   : > { %v1159_v16 = vpop.f32.mrf.mxu1 }
 0x3dd   : > { %v1213_v17 = vmul.f32 %v1930_v15, %v1159_v16 }
 0x3df   : > { %1693 = vmatmul.msk.f32.gmra.mxu2 %vm901_vm0, %v1213_v17  ;;  %v1235_v17 = vld [vmem:[#allocation5 + $0x40] sm:$0xff] }
 0x3e1   : > { %v1932_v19 = vpop.eup %1931 }
 0x3e2   : > { %v1110_v18 = vpop.xlane.xlu1 %1109 }
 0x3e3   : > { %1933 = vrcp.f32 %v1110_v18 }
 0x3e4   : > { %v1162_v20 = vpop.f32.mrf.mxu1 }
 0x3e5   : > { %v1214_v21 = vmul.f32 %v1932_v19, %v1162_v20  ;;  %v1236_v20 = vld [vmem:[#allocation5 + $0x20] sm:$0xff] }
 0x3e7   : > { %1694 = vmatmul.msk.f32.gmra.mxu2 %vm901_vm0, %v1214_v21 }
 0x3e9   : > { %v1934_v23 = vpop.eup %1933 }
 0x3ea   : > { %v1112_v22 = vpop.xlane.xlu2 %1111 }
 0x3eb   : > { %1935 = vrcp.f32 %v1112_v22 }
 0x3ec   : > { %v1165_v24 = vpop.f32.mrf.mxu1 }
 0x3ed   : > { %v1215_v25 = vmul.f32 %v1934_v23, %v1165_v24  ;;  %v1237_v23 = vld [vmem:[#allocation5 + $0x10] sm:$0xff] }
 0x3ef   : > { %1695 = vmatmul.msk.f32.gmra.mxu2 %vm901_vm0, %v1215_v25 }
 0x3f1   : > { %v1936_v27 = vpop.eup %1935 }
 0x3f2   : > { %v1114_v26 = vpop.xlane.xlu1 %1113 }
 0x3f3   : > { %1937 = vrcp.f32 %v1114_v26  ;;  %v1238_v26 = vld [vmem:[#allocation5 + $0x38] sm:$0xff] }
 0x3f4   : > { %v1168_v28 = vpop.f32.mrf.mxu1 }
 0x3f5   : > { %v1216_v29 = vmul.f32 %v1936_v27, %v1168_v28 }
 0x3f7   : > { %1696 = vmatmul.msk.f32.gmra.mxu2 %vm901_vm0, %v1216_v29  ;;  %v1239_v29 = vld [vmem:[#allocation5 + $0x60] sm:$0xff] }
 0x3f9   : > { %v1938_v31 = vpop.eup %1937 }
 0x3fa   : > { %v1116_v30 = vpop.xlane.xlu2 %1115 }
 0x3fb   : > { %1939 = vrcp.f32 %v1116_v30 }
 0x3fc   : > { %v1171_v32 = vpop.f32.mrf.mxu1 }
 0x3fd   : > { %v1217_v33 = vmul.f32 %v1938_v31, %v1171_v32  ;;  %v1240_v32 = vld [vmem:[#allocation5 + $0x70] sm:$0xff] }
 0x3ff   : > { %1697 = vmatmul.msk.f32.gmra.mxu2 %vm901_vm0, %v1217_v33 }
 0x401   : > { %v1940_v35 = vpop.eup %1939 }
 0x402   : > { %v1118_v34 = vpop.xlane.xlu2 %1117 }
 0x403   : > { %1941 = vrcp.f32 %v1118_v34 }
 0x404   : > { %v1174_v36 = vpop.f32.mrf.mxu1 }
 0x405   : > { %v1218_v37 = vmul.f32 %v1940_v35, %v1174_v36  ;;  %v1241_v35 = vld [vmem:[#allocation5 + $0x78] sm:$0xff] }
 0x407   : > { %1698 = vmatmul.msk.f32.gmra.mxu2 %vm901_vm0, %v1218_v37 }
 0x409   : > { %v1942_v38 = vpop.eup %1941 }
 0x40a   : > { %v1120_v41 = vpop.xlane.xlu2 %1119 }
 0x40b   : > { %1943 = vrcp.f32 %v1120_v41 }
 0x40c   : > { %v1177_v39 = vpop.f32.mrf.mxu1 }
 0x40d   : > { %v1219_v40 = vmul.f32 %v1942_v38, %v1177_v39  ;;  %v1242_v38 = vld [vmem:[#allocation5 + $0x28] sm:$0xff] }
 0x40f   : > { %1699 = vmatmul.msk.f32.gmra.mxu2 %vm901_vm0, %v1219_v40 }
 0x411   : > { %v1944_v42 = vpop.eup %1943 }
 0x418   : > { %v1122_v44 = vpop.xlane.xlu1 %1121 }
 0x419   : > { %1945 = vrcp.f32 %v1122_v44 }
 0x41a   : > { %v1180_v43 = vpop.f32.mrf.mxu3 }
 0x41b   : > { %v1220_v45 = vmul.f32 %v1944_v42, %v1180_v43 }
 0x41d   : > { %1700 = vmatmul.msk.f32.gmra.mxu2 %vm901_vm0, %v1220_v45 }
 0x41f   : > { %v1946_v47 = vpop.eup %1945 }
 0x420   : > { %v1124_v46 = vpop.xlane.xlu1 %1123 }
 0x421   : > { %1947 = vrcp.f32 %v1124_v46 }
 0x427   : > { %v1948_v51 = vpop.eup %1947 }
 0x428   : > { %v1183_v48 = vpop.f32.mrf.mxu3  ;;  %v1126_v50 = vpop.xlane.xlu1 %1125 }
 0x429   : > { %v1221_v49 = vmul.f32 %v1946_v47, %v1183_v48  ;;  %1949 = vrcp.f32 %v1126_v50 }
 0x42b   : > { %1701 = vmatmul.msk.f32.vlgmr.msra.gmra.mxu3 %vm901_vm0, %v1221_v49 }
 0x42f   : > { %v1950_v56 = vpop.eup %1949 }
 0x430   : > { %v1186_v53 = vpop.f32.mrf.mxu3 }
 0x431   : > { %v1222_v54 = vmul.f32 %v1948_v51, %v1186_v53 }
 0x433   : > { %1702 = vmatmul.msk.f32.gmra.mxu3 %vm901_vm0, %v1222_v54 }
 0x438   : > { %v1189_v57 = vpop.f32.mrf.mxu3 }
 0x439   : > { %v1223_v52 = vmul.f32 %v1950_v56, %v1189_v57 }
 0x43a   : > { %v1308_v60 = vpop.f32.mrf.mxu2 }
 0x43b   : > { %v1356_v61 = vadd.f32 %v1308_v60, %v1227_v58  ;;  %1703 = vmatmul.msk.f32.gmra.mxu3 %vm901_vm0, %v1223_v52 }
 0x43d   : > { %1372 = vst [vmem:[#allocation5 + $0x30] sm:$0xff] %v1356_v61 }
 0x442   : > { %v1311_v55 = vpop.f32.mrf.mxu2 }
 0x443   : > { %v1357_v63 = vadd.f32 %v1311_v55, %v1228_v62 }
 0x445   : > { %1373 = vst [vmem:[#allocation5] sm:$0xff] %v1357_v63 }
 0x44a   : > { %v1314_v59 = vpop.f32.mrf.mxu2 }
 0x44b   : > { %v1358_v1 = vadd.f32 %v1314_v59, %v1229_v0 }
 0x44d   : > { %1374 = vst [vmem:[#allocation5 + $0x58] sm:$0xff] %v1358_v1 }
 0x452   : > { %v1317_v3 = vpop.f32.mrf.mxu2 }
 0x453   : > { %v1359_v4 = vadd.f32 %v1317_v3, %v1230_v2 }
 0x455   : > { %1375 = vst [vmem:[#allocation5 + $0x18] sm:$0xff] %v1359_v4 }
 0x45a   : > { %v1320_v6 = vpop.f32.mrf.mxu2 }
 0x45b   : > { %v1360_v7 = vadd.f32 %v1320_v6, %v1231_v5 }
 0x45d   : > { %1376 = vst [vmem:[#allocation5 + $0x50] sm:$0xff] %v1360_v7 }
 0x462   : > { %v1323_v9 = vpop.f32.mrf.mxu2 }
 0x463   : > { %v1361_v10 = vadd.f32 %v1323_v9, %v1232_v8 }
 0x465   : > { %1377 = vst [vmem:[#allocation5 + $0x68] sm:$0xff] %v1361_v10 }
 0x46a   : > { %v1326_v12 = vpop.f32.mrf.mxu2 }
 0x46b   : > { %v1362_v13 = vadd.f32 %v1326_v12, %v1233_v11 }
 0x46d   : > { %1378 = vst [vmem:[#allocation5 + $0x8] sm:$0xff] %v1362_v13 }
 0x472   : > { %v1329_v15 = vpop.f32.mrf.mxu2 }
 0x473   : > { %v1363_v16 = vadd.f32 %v1329_v15, %v1234_v14 }
 0x475   : > { %1379 = vst [vmem:[#allocation5 + $0x48] sm:$0xff] %v1363_v16 }
 0x47a   : > { %v1332_v18 = vpop.f32.mrf.mxu2 }
 0x47b   : > { %v1364_v19 = vadd.f32 %v1332_v18, %v1235_v17 }
 0x47d   : > { %1380 = vst [vmem:[#allocation5 + $0x40] sm:$0xff] %v1364_v19 }
 0x482   : > { %v1335_v21 = vpop.f32.mrf.mxu2 }
 0x483   : > { %v1365_v22 = vadd.f32 %v1335_v21, %v1236_v20 }
 0x485   : > { %1381 = vst [vmem:[#allocation5 + $0x20] sm:$0xff] %v1365_v22 }
 0x48a   : > { %v1338_v24 = vpop.f32.mrf.mxu2 }
 0x48b   : > { %v1366_v25 = vadd.f32 %v1338_v24, %v1237_v23 }
 0x48d   : > { %1382 = vst [vmem:[#allocation5 + $0x10] sm:$0xff] %v1366_v25 }
 0x492   : > { %v1341_v27 = vpop.f32.mrf.mxu2 }
 0x493   : > { %v1367_v28 = vadd.f32 %v1341_v27, %v1238_v26 }
 0x495   : > { %1383 = vst [vmem:[#allocation5 + $0x38] sm:$0xff] %v1367_v28 }
 0x4a0   : > { %v1344_v30 = vpop.f32.mrf.mxu2 }
 0x4a1   : > { %v1368_v31 = vadd.f32 %v1344_v30, %v1239_v29 }
 0x4a3   : > { %1384 = vst [vmem:[#allocation5 + $0x60] sm:$0xff] %v1368_v31 }
 0x4ae   : > { %v1347_v33 = vpop.f32.mrf.mxu3 }
 0x4af   : > { %v1369_v34 = vadd.f32 %v1347_v33, %v1240_v32 }
 0x4b1   : > { %1385 = vst [vmem:[#allocation5 + $0x70] sm:$0xff] %v1369_v34 }
 0x4b6   : > { %v1350_v36 = vpop.f32.mrf.mxu3 }
 0x4b7   : > { %v1370_v37 = vadd.f32 %v1350_v36, %v1241_v35 }
 0x4b9   : > { %1386 = vst [vmem:[#allocation5 + $0x78] sm:$0xff] %v1370_v37 }
 0x4bd   : > { %1391 = sbr.rel (%p1704_p1) target bundleno = 1237 (0x4d5), region = 88 }
 0x4be   : > { %v1353_v39 = vpop.f32.mrf.mxu3 }
 0x4bf   : > { %v1371_v40 = vadd.f32 %v1353_v39, %v1242_v38 }
 0x4c1   : > { %1387 = vst [vmem:[#allocation5 + $0x28] sm:$0xff] %v1371_v40 }
 0x4c2   : > { %v1392_v41 = vld [vmem:[#allocation5 + $0x30] sm:$0xff]  ;;  %v1951_v42 = vld [vmem:[%s2803_s7] ss:$0 sm:$0xff]  ;;  %v1394_v44 = vld [vmem:[#allocation5 + $0x58] sm:$0xff] }
 0x4c3   : > { %v1393_v43 = vld [vmem:[#allocation5] sm:$0xff]  ;;  %v1395_v45 = vld [vmem:[#allocation5 + $0x18] sm:$0xff]  ;;  %v1412_v46 = vadd.f32 %v1951_v42, %v1392_v41  ;;  %v1414_v48 = vadd.f32 %v1951_v42, %v1394_v44  ;;  %v1396_v49 = vld [vmem:[#allocation5 + $0x50] sm:$0xff] }
 0x4c4   : > { %v1413_v47 = vadd.f32 %v1951_v42, %v1393_v43  ;;  %v1397_v50 = vld [vmem:[#allocation5 + $0x68] sm:$0xff]  ;;  %v1415_v51 = vadd.f32 %v1951_v42, %v1395_v45  ;;  %v1416_v54 = vadd.f32 %v1951_v42, %v1396_v49  ;;  %v1400_v58 = vld [vmem:[#allocation5 + $0x40] sm:$0xff]  ;;  %v1402_v62 = vld [vmem:[#allocation5 + $0x10] sm:$0xff] }
 0x4c5   : > { %v1398_v53 = vld [vmem:[#allocation5 + $0x8] sm:$0xff]  ;;  %1428 = vst [vmem:[%s2534_s21] sm:$0xff] %v1412_v46  ;;  %v1417_v57 = vadd.f32 %v1951_v42, %v1397_v50  ;;  %v1401_v60 = vld [vmem:[#allocation5 + $0x20] sm:$0xff]  ;;  %v1420_v55 = vadd.f32 %v1951_v42, %v1400_v58  ;;  %v1403_v63 = vld [vmem:[#allocation5 + $0x38] sm:$0xff]  ;;  %v1422_v1 = vadd.f32 %v1951_v42, %v1402_v62 }
 0x4c6   : > { %v1399_v56 = vld [vmem:[#allocation5 + $0x48] sm:$0xff]  ;;  %1429 = vst [vmem:[%s2534_s21 + $0x8] sm:$0xff] %v1413_v47  ;;  %v1418_v52 = vadd.f32 %v1951_v42, %v1398_v53  ;;  %v1421_v0 = vadd.f32 %v1951_v42, %v1401_v60  ;;  %v1404_v59 = vld [vmem:[#allocation5 + $0x60] sm:$0xff]  ;;  %v1405_v2 = vld [vmem:[#allocation5 + $0x70] sm:$0xff]  ;;  %v1423_v3 = vadd.f32 %v1951_v42, %v1403_v63 }
 0x4c7   : > { %1430 = vst [vmem:[%s2534_s21 + $0x10] sm:$0xff] %v1414_v48  ;;  %v1419_v61 = vadd.f32 %v1951_v42, %v1399_v56  ;;  %v1406_v4 = vld [vmem:[#allocation5 + $0x78] sm:$0xff]  ;;  %v1424_v5 = vadd.f32 %v1951_v42, %v1404_v59  ;;  %v1425_v7 = vadd.f32 %v1951_v42, %v1405_v2 }
 0x4c8   : > { %1431 = vst [vmem:[%s2534_s21 + $0x18] sm:$0xff] %v1415_v51  ;;  %v1407_v6 = vld [vmem:[#allocation5 + $0x28] sm:$0xff]  ;;  %v1426_v8 = vadd.f32 %v1951_v42, %v1406_v4 }
 0x4c9   : > { %1432 = vst [vmem:[%s2534_s21 + $0x20] sm:$0xff] %v1416_v54  ;;  %v1427_v9 = vadd.f32 %v1951_v42, %v1407_v6 }
 0x4ca   : > { %1433 = vst [vmem:[%s2534_s21 + $0x28] sm:$0xff] %v1417_v57 }
 0x4cb   : > { %1434 = vst [vmem:[%s2534_s21 + $0x30] sm:$0xff] %v1418_v52 }
 0x4cc   : > { %1435 = vst [vmem:[%s2534_s21 + $0x38] sm:$0xff] %v1419_v61 }
 0x4cd   : > { %1436 = vst [vmem:[%s2534_s21 + $0x40] sm:$0xff] %v1420_v55 }
 0x4ce   : > { %1437 = vst [vmem:[%s2534_s21 + $0x48] sm:$0xff] %v1421_v0 }
 0x4cf   : > { %1438 = vst [vmem:[%s2534_s21 + $0x50] sm:$0xff] %v1422_v1 }
 0x4d0   : > { %1439 = vst [vmem:[%s2534_s21 + $0x58] sm:$0xff] %v1423_v3 }
 0x4d1   : > { %1440 = vst [vmem:[%s2534_s21 + $0x60] sm:$0xff] %v1424_v5 }
 0x4d2   : > { %1441 = vst [vmem:[%s2534_s21 + $0x68] sm:$0xff] %v1425_v7 }
 0x4d3   : > { %1442 = vst [vmem:[%s2534_s21 + $0x70] sm:$0xff] %v1426_v8 }
 0x4d4   : > { %1443 = vst [vmem:[%s2534_s21 + $0x78] sm:$0xff] %v1427_v9 }
 0x4d5 PF: > { %s2846_s30 = sld [smem:[#allocation25_spill]]  ;;  %s1459_s19 = sshll.u32 %s2534_s21, 4  ;;  %s1460_s19 = int_to_ptr.vmem [resolvable:$true] %s1459_s19 }
 0x4d6   : > { %s2848_s17 = sld [smem:[#allocation37_spill]]  ;;  %s1445_s8 = scalar_lea.sflag [#allocation8], %s2507_s1 }
 0x4db   : > { %s1713_s25 = sshll.u32 %s2846_s30, 7 }
 0x4dc   : > { %s1458_s23 = scalar_lea.hbm %s2848_s17, %s1713_s25  ;;  %s2182_s20 = scalar_lea.hbm %s2848_s17, 256 }
 0x4dd   : > { %s1461_s26 = sshll.u32 %s1458_s23, 4  ;;  %s1462_s26 = int_to_ptr.hbm [resolvable:$true] %s1461_s26 }
 0x4de   : > { %s2176_s18 = sshra.s32 %s1462_s26, 4  ;;  %s2177_s18 = int_to_ptr.hbm [resolvable:$true] %s2176_s18 }
 0x4df   : > { %s2178_s0 = scalar_lea.hbm %s2177_s18, 128  ;;  %p2183_p12 = scmp.lt.s32.totalorder %s2177_s18, %s2848_s17 }
 0x4e0   : > { %p2179_p4 = scmp.ne.s32.totalorder %s2177_s18, %s2178_s0  ;;  %p2184_p13 = scmp.lt.s32.totalorder %s2182_s20, %s2178_s0 }
 0x4e2   : > { %p2180_p10 = pnand %p2179_p4, %p2427_p3  ;;  %p2185_p0 = por %p2184_p13, %p2183_p12 }
 0x4e4   : > { %p2181_p11 = pneg %p2180_p10 }
 0x4e6   : > { %p2186_p5 = pnand %p2185_p0, %p2181_p11 }
 0x4e8   : > { %2189 = shalt.err (!%p2186_p5)
}
 0x4e9   : > { %s2281_s1 = smov 128   ;;  %s2282_s21 = smov 8  }
 0x4ea   : > { %1774 = dma.vmem_to_hbm [thread:$0]  (%p2427_p3), %s1460_s19, 2048, %s1462_s26, %s1445_s8, %s2281_s1, %s2281_s1, %s2282_s21  }
 0x4eb PF: > { %s2849_s14 = sld [smem:[#allocation24_spill]]  ;;  %p1812_p7 = scmp.ge.s32.totalorder %s2272_s12, 2 }
 0x4ed   : > { %p1800_p9 = pnand %p1812_p7, %p2383_p6 }
 0x4ef   : > { %p1801_p2 = pneg %p1800_p9 }
 0x4f1   : > { %s1476_s22 = sand.u32 1, %s2849_s14  }
 0x4f2   : > { %s1477_s27 = scalar_lea.sflag [#allocation8], %s1476_s22 }
 0x4f3   : > { %2239 = dma.done.wait (%p1801_p2), %s1477_s27, 2048  }
 0x4f4   : > { %2241 = vsyncadd (%p1801_p2), %s1477_s27, 4294965248  ;;  %s29_s12 = sadd.s32 1, %s2272_s12   ;;  %s2851_s30 = sld [smem:[#allocation26_spill]] }
 0x4f5   : > { %p26_p8 = scmp.ge.s32.totalorder %s29_s12, 18   ;;  %s2852_s9 = sld [smem:[#allocation27_spill]] }
 0x4f6   : > { %s2853_s10 = sld [smem:[#allocation29_spill]]  ;;  %s2855_s27 = smov %s2248_s28 }
 0x4f7   : > { %s2854_s11 = sld [smem:[#allocation31_spill]]  ;;  %s2856_s28 = smov %s2252_s29 }
 0x4f8   : > { %s2857_s29 = smov %s2450_s5  ;;  %28 = sbr.rel (!%p26_p8) target bundleno = 18 (0x12), region = 149 }
 0x4fd   :  { %1483 = vsyncpa [#allocation7], 1 }
 0x4fe   :  { %1485 = vsyncpa [#allocation7 + $0x1], 1 }
 0x4ff   :  { %1486 = vsyncpa [#allocation10], 1 }
 0x500   :  { %1488 = vsyncpa [#allocation10 + $0x1], 1 }
 0x501   :  { %1489 = vsyncpa [#allocation13], 1 }
 0x502   :  { %1490 = vsyncpa [#allocation16], 1 }
 0x503   :  { %1491 = vsyncpa [#allocation8], 1 }
 0x504   :  { %1493 = vsyncpa [#allocation8 + $0x1], 1 }

</bundles_post_ra>
